<compile_context>
chip_gen: v7x
topology: tpu7x:2x2x1
jax: 0.10.0
libtpu: 0.0.40
codegen_flags: <defaults>
</compile_context>

<pallas_src>
import jax
import jax.numpy as jnp
from jax.experimental import pallas as pl
from jax.experimental.pallas import tpu as pltpu


def _discriminator_kernel(x_ref, w1_ref, b1_ref, w2_ref, b2_ref, w3_ref, b3_ref, o_ref):
    # Layer 1 (MXU): (TB, D) @ (D, 128) -> f32 acc, + bias, ReLU.
    h1 = jnp.dot(x_ref[...], w1_ref[...], preferred_element_type=jnp.float32)
    h1 = jnp.maximum(h1 + b1_ref[...], 0.0)

    # Layer 2 (MXU): (TB, 128) @ (128, 64) -> f32 acc, + bias, ReLU.
    h2 = jnp.dot(h1.astype(w2_ref.dtype), w2_ref[...],
                 preferred_element_type=jnp.float32)
    h2 = jnp.maximum(h2 + b2_ref[...], 0.0)

    # Layer 3: N=1 matmul replaced by VPU multiply + cross-lane reduce.
    # Produces a (TB,) logit row oriented for a lane-dense store.
    logit = jnp.sum(h2 * w3_ref[...], axis=-1) + b3_ref[0]

    sig = 1.0 / (1.0 + jnp.exp(-logit))
    o_ref[...] = sig.reshape(o_ref.shape).astype(o_ref.dtype)


def _vmem_estimate(batch_tile, input_dim, itemsize):
    """Rough bytes of VMEM the kernel needs (double-buffered x/out + weights + acts)."""
    weights = 2 * (input_dim * 128 + 128 * 64 + 64 + 128 + 64) * 4  # resident, f32-ish
    x_bytes = 2 * batch_tile * input_dim * itemsize                  # double-buffered
    out_bytes = 2 * batch_tile * 4
    acts = batch_tile * (128 + 64 + 64) * 4
    return weights + x_bytes + out_bytes + acts


def _pick_batch_tile(batch, input_dim, itemsize, budget_bytes=20 * 1024 * 1024):
    """Largest tile in {1024, 512, 256} that fits the VMEM budget; don't over-pad tiny B."""
    tile = 1024
    while tile > 256 and _vmem_estimate(tile, input_dim, itemsize) > budget_bytes:
        tile //= 2
    b_round = max(256, -(-batch // 256) * 256)   # round B up to a multiple of 256
    return min(tile, b_round)


def discriminator_forward(x, params, *, batch_tile=None,
                          compute_dtype=jnp.float32, vmem_limit_bytes=None):
    """x: (B, input_dim) float32. params: w1 (D,128), b1 (1,128), w2 (128,64),
    b2 (1,64), w3 (1,64), b3 (1,). Returns (B, 1) float32 probabilities."""
    B, D = x.shape
    w1, b1 = params["w1"], params["b1"]
    w2, b2 = params["w2"], params["b2"]
    w3, b3 = params["w3"], params["b3"]

    itemsize = jnp.dtype(compute_dtype).itemsize
    if batch_tile is None:
        batch_tile = _pick_batch_tile(B, D, itemsize)
    assert batch_tile % 8 == 0, "batch_tile must be a multiple of 8 (sublane)"

    num_tiles = -(-B // batch_tile)
    B_pad = num_tiles * batch_tile
    if B_pad != B:
        x = jnp.pad(x, ((0, B_pad - B), (0, 0)))

    # Optional reduced-precision matmul operands (activations/epilogue stay f32).
    x_c = x.astype(compute_dtype)
    w1_c = w1.astype(compute_dtype)
    w2_c = w2.astype(compute_dtype)

    if vmem_limit_bytes is None:
        est = _vmem_estimate(batch_tile, D, itemsize)
        if est > 14 * 1024 * 1024:
            # v5e default scoped VMEM is 16 MiB; raise it (cap well under v7x's 64 MiB).
            vmem_limit_bytes = min(32 * 1024 * 1024, (est * 3) // 2)

    out = pl.pallas_call(
        _discriminator_kernel,
        out_shape=jax.ShapeDtypeStruct((num_tiles, 1, batch_tile), jnp.float32),
        grid_spec=pltpu.PrefetchScalarGridSpec(
            num_scalar_prefetch=0,
            grid=(num_tiles,),
            in_specs=[
                pl.BlockSpec((batch_tile, D), lambda i: (i, 0)),    # x tile
                pl.BlockSpec((D, 128), lambda i: (0, 0)),           # w1 (resident)
                pl.BlockSpec((1, 128), lambda i: (0, 0)),           # b1
                pl.BlockSpec((128, 64), lambda i: (0, 0)),          # w2
                pl.BlockSpec((1, 64), lambda i: (0, 0)),            # b2
                pl.BlockSpec((1, 64), lambda i: (0, 0)),            # w3 row
                pl.BlockSpec(memory_space=pltpu.MemorySpace.SMEM),  # b3 scalar
            ],
            out_specs=pl.BlockSpec((1, 1, batch_tile), lambda i: (i, 0, 0)),
        ),
        compiler_params=pltpu.CompilerParams(
            dimension_semantics=("parallel",),
            vmem_limit_bytes=vmem_limit_bytes,
        ),
    )(x_c, w1_c, b1, w2_c, b2, w3, b3)

    # Lane-dense slab -> (B, 1) column; drop padded rows.
    return out.reshape(B_pad, 1)[:B]


def init_discriminator_params(key, input_dim):
    """Deterministic init matching PyTorch Linear's U(-1/sqrt(fan_in), 1/sqrt(fan_in)).
    Weights stored as (in, out); layer-3 weight kept as a (1, 64) row, b3 as (1,)."""
    k1, k2, k3, k4, k5, k6 = jax.random.split(key, 6)

    def u(k, shape, fan_in):
        bound = 1.0 / (fan_in ** 0.5)
        return jax.random.uniform(k, shape, jnp.float32, -bound, bound)

    return {
        "w1": u(k1, (input_dim, 128), input_dim),
        "b1": u(k2, (1, 128), input_dim),
        "w2": u(k3, (128, 64), 128),
        "b2": u(k4, (1, 64), 128),
        "w3": u(k5, (1, 64), 64),
        "b3": u(k6, (1,), 64),
    }


def _reference_forward(x, p):
    h1 = jnp.maximum(x @ p["w1"] + p["b1"], 0.0)
    h2 = jnp.maximum(h1 @ p["w2"] + p["b2"], 0.0)
    logit = h2 @ p["w3"].T + p["b3"]
    return 1.0 / (1.0 + jnp.exp(-logit))


if __name__ == "__main__":
    key = jax.random.PRNGKey(0)
    k_param, k_x1, k_x2 = jax.random.split(key, 3)

    input_dim = 32
    params = init_discriminator_params(k_param, input_dim)

    # Small batch (padded internally to the batch tile).
    x1 = jax.random.normal(k_x1, (8, input_dim), jnp.float32)
    out1 = jax.block_until_ready(discriminator_forward(x1, params))
    ref1 = _reference_forward(x1, params)
    assert out1.shape == (8, 1)
    assert jnp.allclose(out1, ref1, atol=1e-5, rtol=1e-5), "mismatch vs reference (B=8)"

    # Batch not divisible by the tile, exercises the padding path.
    x2 = jax.random.normal(k_x2, (77, input_dim), jnp.float32)
    out2 = jax.block_until_ready(discriminator_forward(x2, params))
    ref2 = _reference_forward(x2, params)
    assert out2.shape == (77, 1)
    assert jnp.allclose(out2, ref2, atol=1e-5, rtol=1e-5), "mismatch vs reference (B=77)"

    print("KERNEL_OK")
</pallas_src>

<mosaic_0001>
module attributes {stable_mosaic.version = 11 : i64} {
  func.func @_discriminator_kernel(%arg0: i32, %arg1: memref<256x32xf32, #tpu.memory_space<vmem>>, %arg2: memref<32x128xf32, #tpu.memory_space<vmem>>, %arg3: memref<1x128xf32, #tpu.memory_space<vmem>>, %arg4: memref<128x64xf32, #tpu.memory_space<vmem>>, %arg5: memref<1x64xf32, #tpu.memory_space<vmem>>, %arg6: memref<1x64xf32, #tpu.memory_space<vmem>>, %arg7: memref<1xf32, #tpu.memory_space<smem>>, %arg8: memref<1x1x256xf32, #tpu.memory_space<vmem>>) attributes {dimension_semantics = [#tpu.dimension_semantics<parallel>], iteration_bounds = array<i64: 1>, scalar_prefetch = 0 : i64, scratch_operands = 0 : i64, tpu.core_type = #tpu.core_type<tc>, window_params = [{transform_indices = @transform_0, window_bounds = array<i64: 256, 32>}, {pipeline_mode = #tpu.pipeline_mode<synchronous>, transform_indices = @transform_1, window_bounds = array<i64: 32, 128>}, {pipeline_mode = #tpu.pipeline_mode<synchronous>, transform_indices = @transform_2, window_bounds = array<i64: 1, 128>}, {pipeline_mode = #tpu.pipeline_mode<synchronous>, transform_indices = @transform_3, window_bounds = array<i64: 128, 64>}, {pipeline_mode = #tpu.pipeline_mode<synchronous>, transform_indices = @transform_4, window_bounds = array<i64: 1, 64>}, {pipeline_mode = #tpu.pipeline_mode<synchronous>, transform_indices = @transform_5, window_bounds = array<i64: 1, 64>}, {transform_indices = @transform_6, window_bounds = array<i64: 1>}, {transform_indices = @transform_7, window_bounds = array<i64: 1, 1, 256>}]} {
    %c0 = arith.constant 0 : index
    %c0_0 = arith.constant 0 : index
    %0 = vector.load %arg1[%c0, %c0_0] : memref<256x32xf32, #tpu.memory_space<vmem>>, vector<256x32xf32>
    %c0_1 = arith.constant 0 : index
    %c0_2 = arith.constant 0 : index
    %1 = vector.load %arg2[%c0_1, %c0_2] : memref<32x128xf32, #tpu.memory_space<vmem>>, vector<32x128xf32>
    %cst = arith.constant dense<0.000000e+00> : vector<256x128xf32>
    %2 = tpu.matmul %0, %1, %cst {dimension_numbers = #tpu.dot_dimension_numbers<[1], [0], [0], [1], [0, 0, 1, 1], [], []>} : vector<256x32xf32>, vector<32x128xf32>, vector<256x128xf32> -> vector<256x128xf32>
    %c0_3 = arith.constant 0 : index
    %c0_4 = arith.constant 0 : index
    %3 = vector.load %arg3[%c0_3, %c0_4] : memref<1x128xf32, #tpu.memory_space<vmem>>, vector<1x128xf32>
    %4 = vector.broadcast %3 : vector<1x128xf32> to vector<256x128xf32>
    %5 = arith.addf %2, %4 : vector<256x128xf32>
    %cst_5 = arith.constant 0.000000e+00 : f32
    %6 = vector.broadcast %cst_5 : f32 to vector<256x128xf32>
    %7 = arith.maximumf %5, %6 : vector<256x128xf32>
    %c0_6 = arith.constant 0 : index
    %c0_7 = arith.constant 0 : index
    %8 = vector.load %arg4[%c0_6, %c0_7] : memref<128x64xf32, #tpu.memory_space<vmem>>, vector<128x64xf32>
    %cst_8 = arith.constant dense<0.000000e+00> : vector<256x64xf32>
    %9 = tpu.matmul %7, %8, %cst_8 {dimension_numbers = #tpu.dot_dimension_numbers<[1], [0], [0], [1], [0, 0, 1, 1], [], []>} : vector<256x128xf32>, vector<128x64xf32>, vector<256x64xf32> -> vector<256x64xf32>
    %c0_9 = arith.constant 0 : index
    %c0_10 = arith.constant 0 : index
    %10 = vector.load %arg5[%c0_9, %c0_10] : memref<1x64xf32, #tpu.memory_space<vmem>>, vector<1x64xf32>
    %11 = vector.broadcast %10 : vector<1x64xf32> to vector<256x64xf32>
    %12 = arith.addf %9, %11 : vector<256x64xf32>
    %cst_11 = arith.constant 0.000000e+00 : f32
    %13 = vector.broadcast %cst_11 : f32 to vector<256x64xf32>
    %14 = arith.maximumf %12, %13 : vector<256x64xf32>
    %c0_12 = arith.constant 0 : index
    %c0_13 = arith.constant 0 : index
    %15 = vector.load %arg6[%c0_12, %c0_13] : memref<1x64xf32, #tpu.memory_space<vmem>>, vector<1x64xf32>
    %16 = vector.broadcast %15 : vector<1x64xf32> to vector<256x64xf32>
    %17 = arith.mulf %14, %16 : vector<256x64xf32>
    %cst_14 = arith.constant dense<0.000000e+00> : vector<256xf32>
    %18 = vector.multi_reduction <add>, %17, %cst_14 [1] : vector<256x64xf32> to vector<256xf32>
    %c0_15 = arith.constant 0 : index
    %19 = memref.load %arg7[%c0_15] : memref<1xf32, #tpu.memory_space<smem>>
    %20 = vector.broadcast %19 : f32 to vector<256xf32>
    %21 = arith.addf %18, %20 : vector<256xf32>
    %cst_16 = arith.constant 0.000000e+00 : f32
    %22 = vector.broadcast %cst_16 : f32 to vector<256xf32>
    %23 = arith.subf %22, %21 : vector<256xf32>
    %24 = math.exp %23 : vector<256xf32>
    %cst_17 = arith.constant 1.000000e+00 : f32
    %25 = vector.broadcast %cst_17 : f32 to vector<256xf32>
    %26 = arith.addf %25, %24 : vector<256xf32>
    %cst_18 = arith.constant 1.000000e+00 : f32
    %27 = vector.broadcast %cst_18 : f32 to vector<256xf32>
    %28 = arith.divf %27, %26 : vector<256xf32>
    %29 = vector.shape_cast %28 : vector<256xf32> to vector<1x1x256xf32>
    %c0_19 = arith.constant 0 : index
    %c0_20 = arith.constant 0 : index
    %c0_21 = arith.constant 0 : index
    %30 = vector.load %arg8[%c0_19, %c0_20, %c0_21] : memref<1x1x256xf32, #tpu.memory_space<vmem>>, vector<1x1x256xf32>
    tpu.vector_store %arg8[%c0_19, %c0_20, %c0_21], %29 {strides = array<i32>} : memref<1x1x256xf32, #tpu.memory_space<vmem>>, vector<1x1x256xf32>,
    return
  }
  func.func @transform_0(%arg0: i32) -> (i32, i32) {
    %c0_i32 = arith.constant 0 : i32
    %c0_i32_0 = arith.constant 0 : i32
    return %arg0, %c0_i32 : i32, i32
  }
  func.func @transform_1(%arg0: i32) -> (i32, i32) {
    %c0_i32 = arith.constant 0 : i32
    %c0_i32_0 = arith.constant 0 : i32
    %c0_i32_1 = arith.constant 0 : i32
    return %c0_i32, %c0_i32_0 : i32, i32
  }
  func.func @transform_2(%arg0: i32) -> (i32, i32) {
    %c0_i32 = arith.constant 0 : i32
    %c0_i32_0 = arith.constant 0 : i32
    %c0_i32_1 = arith.constant 0 : i32
    return %c0_i32, %c0_i32_0 : i32, i32
  }
  func.func @transform_3(%arg0: i32) -> (i32, i32) {
    %c0_i32 = arith.constant 0 : i32
    %c0_i32_0 = arith.constant 0 : i32
    %c0_i32_1 = arith.constant 0 : i32
    return %c0_i32, %c0_i32_0 : i32, i32
  }
  func.func @transform_4(%arg0: i32) -> (i32, i32) {
    %c0_i32 = arith.constant 0 : i32
    %c0_i32_0 = arith.constant 0 : i32
    %c0_i32_1 = arith.constant 0 : i32
    return %c0_i32, %c0_i32_0 : i32, i32
  }
  func.func @transform_5(%arg0: i32) -> (i32, i32) {
    %c0_i32 = arith.constant 0 : i32
    %c0_i32_0 = arith.constant 0 : i32
    %c0_i32_1 = arith.constant 0 : i32
    return %c0_i32, %c0_i32_0 : i32, i32
  }
  func.func @transform_6(%arg0: i32) -> i32 {
    %c0_i32 = arith.constant 0 : i32
    %c0_i32_0 = arith.constant 0 : i32
    return %c0_i32 : i32
  }
  func.func @transform_7(%arg0: i32) -> (i32, i32, i32) {
    %c0_i32 = arith.constant 0 : i32
    %c0_i32_0 = arith.constant 0 : i32
    %c0_i32_1 = arith.constant 0 : i32
    return %arg0, %c0_i32, %c0_i32_0 : i32, i32, i32
  }
}

</mosaic_0001>

<bundles_post_ra>
// kernel: tpu_custom_call.1
= control target key start
LH: loop header
LB: loop body
LE: loop exit
PB: predicated region body
PF: predicated region fallthrough
CT: control target
= control target key end

     0   :  { %vm71_vm0 = vcmask 261120   ;;  %s5798_s0 = inlined_call_operand.vmem [shape: f32[256,32], index: 0, kind: input, shape index: {}]   ;;  %s5799_s1 = inlined_call_operand.vmem [shape: f32[32,128], index: 1, kind: input, shape index: {}]   ;;  %s5800_s2 = inlined_call_operand.vmem [shape: f32[1,128], index: 2, kind: input, shape index: {}]   ;;  %s5801_s3 = inlined_call_operand.vmem [shape: f32[128,64], index: 3, kind: input, shape index: {}]   ;;  %s5802_s4 = inlined_call_operand.vmem [shape: f32[1,64], index: 4, kind: input, shape index: {}]   ;;  %s5803_s5 = inlined_call_operand.vmem [shape: f32[1,64], index: 5, kind: input, shape index: {}]   ;;  %s5804_s6 = inlined_call_operand.<no memory space> [shape: f32[1], index: 6, kind: input, shape index: {}]   ;;  %s5805_s7 = inlined_call_operand.hbm [shape: f32[1,1,256], index: 7, kind: output, shape index: {}]  }
   0x1   :  { %v60_v0 = vld [vmem:[%s5799_s1] sm:$0xff]  ;;  %v61_v1 = vld [vmem:[%s5799_s1 + $0x8] sm:$0xff]  ;;  %v62_v2 = vld [vmem:[%s5799_s1 + $0x10] sm:$0xff] }
   0x2   :  { %v4267_v3 = vpack.c.bf16 %v61_v1, %v60_v0  ;;  %v63_v4 = vld [vmem:[%s5799_s1 + $0x18] sm:$0xff]  ;;  %v28_v5 = vld [vmem:[%s5798_s0] sm:$0xff]  ;;  %v29_v7 = vld [vmem:[%s5798_s0 + $0x8] sm:$0xff] }
   0x3   :  { %v4271_v6 = vpack.c.bf16 %v63_v4, %v62_v2  ;;  %4139 = vmatprep.mubr.msk.f32.mxu0 %vm71_vm0, %v28_v5  ;;  %v30_v8 = vld [vmem:[%s5798_s0 + $0x10] sm:$0xff]  ;;  %v31_v9 = vld [vmem:[%s5798_s0 + $0x18] sm:$0xff]  ;;  %v425_v10 = vld [vmem:[%s5801_s3] sm:$0xff] }
   0x4   :  { %4268 = vmatprep.subr.bf16.mxu0 %v4267_v3  ;;  %v426_v11 = vld [vmem:[%s5801_s3 + $0x8] sm:$0xff]  ;;  %v427_v12 = vld [vmem:[%s5801_s3 + $0x10] sm:$0xff]  ;;  %v32_v13 = vld [vmem:[%s5798_s0 + $0x20] sm:$0xff] }
   0x5   :  { %4270 = vmatpush3.bf16.msra.mxu0 %v4267_v3  ;;  %v4275_v14 = vpack.c.bf16 %v426_v11, %v425_v10  ;;  %v428_v15 = vld [vmem:[%s5801_s3 + $0x18] sm:$0xff]  ;;  %v429_v17 = vld [vmem:[%s5801_s3 + $0x20] sm:$0xff]  ;;  %v430_v18 = vld [vmem:[%s5801_s3 + $0x28] sm:$0xff] }
   0x6   :  { %4272 = vmatprep.subr.bf16.mxu0 %v4271_v6  ;;  %v4279_v16 = vpack.c.bf16 %v428_v15, %v427_v12  ;;  %v33_v19 = vld [vmem:[%s5798_s0 + $0x28] sm:$0xff]  ;;  %v34_v20 = vld [vmem:[%s5798_s0 + $0x30] sm:$0xff]  ;;  %v4283_v21 = vpack.c.bf16 %v430_v18, %v429_v17 }
   0x7   :  { %4307 = vmatprep.subr.bf16.mxu1 %v4275_v14 }
   0x9   :  { %4274 = vmatpush3.bf16.msra.mxu0 %v4271_v6 }
   0xa   :  { %4276 = vmatprep.subr.bf16.mxu0 %v4275_v14 }
   0xc   :  { %4140 = vmatmul.mubr.msk.f32.vlgmr.msra.gmra.mrb[0].mxu0 %vm71_vm0, %v29_v7 }
   0xd   :  { %4142 = vmatprep.mubr.msk.f32.mxu0 %vm71_vm0, %v30_v8  ;;  %4278 = vmatpush3.bf16.msra.mxu0 %v4275_v14 }
   0xe   :  { %4280 = vmatprep.subr.bf16.mxu0 %v4279_v16 }
  0x10   :  { %4143 = vmatmul.mubr.msk.f32.gmra.mrb[2].mxu0 %vm71_vm0, %v31_v9 }
  0x11   :  { %4145 = vmatprep.mubr.msk.f32.mxu0 %vm71_vm0, %v32_v13 }
  0x12   :  { %13 = vsyncpa [#allocation4], 0  ;;  %v431_v22 = vld [vmem:[%s5801_s3 + $0x30] sm:$0xff]  ;;  %v432_v23 = vld [vmem:[%s5801_s3 + $0x38] sm:$0xff]  ;;  %4315 = vmatpush3.bf16.msra.mxu1 %v4275_v14  ;;  %4282 = vmatpush3.bf16.msra.mxu0 %v4279_v16  ;;  %vm744_vm1 = vcmask 523264   ;;  %vm3798_vm2 = vcmask 130112  }
  0x13   :  { %4308 = vmatprep.subr.bf16.mxu1 %v4279_v16  ;;  %v35_v24 = vld [vmem:[%s5798_s0 + $0x38] sm:$0xff]  ;;  %v36_v25 = vld [vmem:[%s5798_s0 + $0x40] sm:$0xff]  ;;  %4284 = vmatprep.subr.bf16.mxu0 %v4283_v21  ;;  %v4287_v26 = vpack.c.bf16 %v432_v23, %v431_v22  ;;  %v434_v28 = vld [vmem:[%s5801_s3 + $0x48] sm:$0xff]  ;;  %vm3805_vm3 = vcmask 195712   ;;  %vm3812_vm4 = vcmask 261312   ;;  %vm3819_vm5 = vcmask 326912  }
  0x14   :  { %4146 = vmatmul.mubr.msk.f32.gmra.mrb[4].mxu0 %vm71_vm0, %v33_v19  ;;  %v433_v27 = vld [vmem:[%s5801_s3 + $0x40] sm:$0xff]  ;;  %v37_v29 = vld [vmem:[%s5798_s0 + $0x48] sm:$0xff]  ;;  %v38_v30 = vld [vmem:[%s5798_s0 + $0x50] sm:$0xff]  ;;  %vm3826_vm6 = vcmask 392512   ;;  %vm3833_vm7 = vcmask 458112   ;;  %vm3840_vm8 = vcmask 523712  }
  0x15   :  { %4148 = vmatprep.mubr.msk.f32.mxu0 %vm71_vm0, %v34_v20  ;;  %v4291_v31 = vpack.c.bf16 %v434_v28, %v433_v27  ;;  %v435_v32 = vld [vmem:[%s5801_s3 + $0x50] sm:$0xff]  ;;  %v436_v33 = vld [vmem:[%s5801_s3 + $0x58] sm:$0xff]  ;;  %v40_v35 = vld [vmem:[%s5798_s0 + $0x60] sm:$0xff]  ;;  %vm3847_vm9 = vcmask 589312   ;;  %vm3854_vm10 = vcmask 654912   ;;  %vm3861_vm11 = vcmask 720512  }
  0x16   :  { %4316 = vmatpush3.bf16.msra.mxu1 %v4279_v16  ;;  %4286 = vmatpush3.bf16.msra.mxu0 %v4283_v21  ;;  %v39_v34 = vld [vmem:[%s5798_s0 + $0x58] sm:$0xff]  ;;  %v4295_v36 = vpack.c.bf16 %v436_v33, %v435_v32  ;;  %v437_v37 = vld [vmem:[%s5801_s3 + $0x60] sm:$0xff]  ;;  %v438_v38 = vld [vmem:[%s5801_s3 + $0x68] sm:$0xff]  ;;  %vm3868_vm12 = vcmask 786112   ;;  %vm3875_vm13 = vcmask 851712   ;;  %vm3882_vm14 = vcmask 917312  }
  0x17   :  { %4309 = vmatprep.subr.bf16.mxu1 %v4283_v21  ;;  %4288 = vmatprep.subr.bf16.mxu0 %v4287_v26  ;;  %v41_v39 = vld [vmem:[%s5798_s0 + $0x68] sm:$0xff]  ;;  %v42_v40 = vld [vmem:[%s5798_s0 + $0x70] sm:$0xff]  ;;  %v4299_v41 = vpack.c.bf16 %v438_v38, %v437_v37  ;;  %v440_v43 = vld [vmem:[%s5801_s3 + $0x78] sm:$0xff]  ;;  %vm3889_vm15 = vcmask 982912  }
  0x18   :  { %4149 = vmatmul.mubr.msk.f32.gmra.mrb[6].mxu0 %vm71_vm0, %v35_v24  ;;  %v439_v42 = vld [vmem:[%s5801_s3 + $0x70] sm:$0xff]  ;;  %v43_v44 = vld [vmem:[%s5798_s0 + $0x78] sm:$0xff]  ;;  %v44_v45 = vld [vmem:[%s5798_s0 + $0x80] sm:$0xff] }
  0x19   :  { %4151 = vmatprep.mubr.msk.f32.mxu0 %vm71_vm0, %v36_v25  ;;  %v4303_v46 = vpack.c.bf16 %v440_v43, %v439_v42  ;;  %v45_v47 = vld [vmem:[%s5798_s0 + $0x88] sm:$0xff]  ;;  %v46_v48 = vld [vmem:[%s5798_s0 + $0x90] sm:$0xff]  ;;  %v47_v49 = vld [vmem:[%s5798_s0 + $0x98] sm:$0xff] }
  0x1a   :  { %4317 = vmatpush3.bf16.msra.mxu1 %v4283_v21  ;;  %4290 = vmatpush3.bf16.msra.mxu0 %v4287_v26  ;;  %v48_v50 = vld [vmem:[%s5798_s0 + $0xa0] sm:$0xff]  ;;  %v49_v51 = vld [vmem:[%s5798_s0 + $0xa8] sm:$0xff]  ;;  %v50_v52 = vld [vmem:[%s5798_s0 + $0xb0] sm:$0xff] }
  0x1b   :  { %4310 = vmatprep.subr.bf16.mxu1 %v4287_v26  ;;  %4292 = vmatprep.subr.bf16.mxu0 %v4291_v31  ;;  %v51_v53 = vld [vmem:[%s5798_s0 + $0xb8] sm:$0xff]  ;;  %v52_v54 = vld [vmem:[%s5798_s0 + $0xc0] sm:$0xff]  ;;  %v53_v55 = vld [vmem:[%s5798_s0 + $0xc8] sm:$0xff] }
  0x1c   :  { %4152 = vmatmul.mubr.msk.f32.gmra.mrb[8].mxu0 %vm71_vm0, %v37_v29  ;;  %v54_v56 = vld [vmem:[%s5798_s0 + $0xd0] sm:$0xff]  ;;  %v55_v57 = vld [vmem:[%s5798_s0 + $0xd8] sm:$0xff]  ;;  %v56_v58 = vld [vmem:[%s5798_s0 + $0xe0] sm:$0xff] }
  0x1d   :  { %4154 = vmatprep.mubr.msk.f32.mxu0 %vm71_vm0, %v38_v30  ;;  %v57_v59 = vld [vmem:[%s5798_s0 + $0xe8] sm:$0xff]  ;;  %v58_v60 = vld [vmem:[%s5798_s0 + $0xf0] sm:$0xff]  ;;  %v59_v61 = vld [vmem:[%s5798_s0 + $0xf8] sm:$0xff] }
  0x1e   :  { %4318 = vmatpush3.bf16.msra.mxu1 %v4287_v26  ;;  %4294 = vmatpush3.bf16.msra.mxu0 %v4291_v31  ;;  %v4714_v62 = vld [vmem:[%s5800_s2] ss:$0 sm:$0xff] }
  0x1f   :  { %4311 = vmatprep.subr.bf16.mxu1 %v4291_v31  ;;  %4296 = vmatprep.subr.bf16.mxu0 %v4295_v36 }
  0x20   :  { %4155 = vmatmul.mubr.msk.f32.gmra.mrb[10].mxu0 %vm71_vm0, %v39_v34 }
  0x21   :  { %4157 = vmatprep.mubr.msk.f32.mxu0 %vm71_vm0, %v40_v35 }
  0x22   :  { %4319 = vmatpush3.bf16.msra.mxu1 %v4291_v31  ;;  %4298 = vmatpush3.bf16.msra.mxu0 %v4295_v36 }
  0x23   :  { %4312 = vmatprep.subr.bf16.mxu1 %v4295_v36  ;;  %4300 = vmatprep.subr.bf16.mxu0 %v4299_v41 }
  0x24   :  { %4158 = vmatmul.mubr.msk.f32.gmra.mrb[12].mxu0 %vm71_vm0, %v41_v39 }
  0x25   :  { %4160 = vmatprep.mubr.msk.f32.mxu0 %vm71_vm0, %v42_v40 }
  0x26   :  { %4320 = vmatpush3.bf16.msra.mxu1 %v4295_v36  ;;  %4302 = vmatpush3.bf16.msra.mxu0 %v4299_v41 }
  0x27   :  { %4313 = vmatprep.subr.bf16.mxu1 %v4299_v41  ;;  %4304 = vmatprep.subr.bf16.mxu0 %v4303_v46 }
  0x28   :  { %4161 = vmatmul.mubr.msk.f32.gmra.mrb[14].mxu0 %vm71_vm0, %v43_v44 }
  0x29   :  { %4163 = vmatprep.mubr.msk.f32.mxu0 %vm71_vm0, %v44_v45 }
  0x2a   :  { %4321 = vmatpush3.bf16.msra.mxu1 %v4299_v41  ;;  %4306 = vmatpush3.bf16.msra.mxu0 %v4303_v46 }
  0x2b   :  { %4314 = vmatprep.subr.bf16.mxu1 %v4303_v46 }
  0x2c   :  { %4164 = vmatmul.mubr.msk.f32.gmra.mrb[16].mxu0 %vm71_vm0, %v45_v47 }
  0x2d   :  { %4166 = vmatprep.mubr.msk.f32.mxu0 %vm71_vm0, %v46_v48 }
  0x2e   :  { %4322 = vmatpush3.bf16.msra.mxu1 %v4303_v46 }
  0x30   :  { %4167 = vmatmul.mubr.msk.f32.gmra.mrb[18].mxu0 %vm71_vm0, %v47_v49 }
  0x31   :  { %4169 = vmatprep.mubr.msk.f32.mxu0 %vm71_vm0, %v48_v50 }
  0x34   :  { %4170 = vmatmul.mubr.msk.f32.gmra.mrb[20].mxu0 %vm71_vm0, %v49_v51 }
  0x35   :  { %4172 = vmatprep.mubr.msk.f32.mxu0 %vm71_vm0, %v50_v52 }
  0x38   :  { %4173 = vmatmul.mubr.msk.f32.gmra.mrb[22].mxu0 %vm71_vm0, %v51_v53 }
  0x39   :  { %4175 = vmatprep.mubr.msk.f32.mxu0 %vm71_vm0, %v52_v54 }
  0x3c   :  { %4176 = vmatmul.mubr.msk.f32.gmra.mrb[24].mxu0 %vm71_vm0, %v53_v55 }
  0x3d   :  { %4178 = vmatprep.mubr.msk.f32.mxu0 %vm71_vm0, %v54_v56 }
  0x40   :  { %4179 = vmatmul.mubr.msk.f32.gmra.mrb[26].mxu0 %vm71_vm0, %v55_v57 }
  0x41   :  { %4181 = vmatprep.mubr.msk.f32.mxu0 %vm71_vm0, %v56_v58 }
  0x44   :  { %4182 = vmatmul.mubr.msk.f32.gmra.mrb[28].mxu0 %vm71_vm0, %v57_v59 }
  0x45   :  { %4184 = vmatprep.mubr.msk.f32.mxu0 %vm71_vm0, %v58_v60 }
  0x48   :  { %4185 = vmatmul.mubr.msk.f32.gmra.mrb[30].mxu0 %vm71_vm0, %v59_v61  ;;  %vm3896_vm0 = vcmask 1048512  }
  0xdf   :  { %v4141_v63 = vpop.f32.mrb[0].mxu0 }
  0xe0   :  { %v240_v0 = vadd.f32 %v4141_v63, %v4714_v62  ;;  %v234_v1 = vpop.f32.mrb[1].mxu0 }
  0xe1   :  { %v235_v2 = vadd.f32 %v4714_v62, %v234_v1 }
  0xe2   :  { %v394_v5 = vmax.f32 %v240_v0, 0.0 }
  0xe3   :  { %v393_v3 = vmax.f32 %v235_v2, 0.0  ;;  %v4144_v4 = vpop.f32.mrb[2].mxu0 }
  0xe4   :  { %v250_v6 = vadd.f32 %v4144_v4, %v4714_v62  ;;  %v244_v7 = vpop.f32.mrb[3].mxu0 }
  0xe5   :  { %v245_v8 = vadd.f32 %v4714_v62, %v244_v7  ;;  %4219 = vmatprep.mubr.f32.mxu0 %v393_v3 }
  0xe6   :  { %4220 = vmatmul.mubr.f32.vlgmr.msra.gmra.mrb[32].mxu0 %v394_v5  ;;  %v396_v11 = vmax.f32 %v250_v6, 0.0 }
  0xe7   :  { %v395_v9 = vmax.f32 %v245_v8, 0.0  ;;  %v4147_v10 = vpop.f32.mrb[4].mxu0 }
  0xe8   :  { %v260_v12 = vadd.f32 %v4147_v10, %v4714_v62  ;;  %v254_v13 = vpop.f32.mrb[5].mxu0 }
  0xe9   :  { %v255_v14 = vadd.f32 %v4714_v62, %v254_v13  ;;  %4222 = vmatprep.mubr.f32.mxu0 %v395_v9 }
  0xea   :  { %4223 = vmatmul.mubr.f32.gmra.mrb[34].mxu0 %v396_v11  ;;  %v398_v17 = vmax.f32 %v260_v12, 0.0 }
  0xeb   :  { %v397_v15 = vmax.f32 %v255_v14, 0.0  ;;  %v4150_v16 = vpop.f32.mrb[6].mxu0 }
  0xec   :  { %v270_v18 = vadd.f32 %v4150_v16, %v4714_v62  ;;  %v264_v19 = vpop.f32.mrb[7].mxu0 }
  0xed   :  { %4225 = vmatprep.mubr.f32.mxu0 %v397_v15  ;;  %v265_v20 = vadd.f32 %v4714_v62, %v264_v19 }
  0xee   :  { %4226 = vmatmul.mubr.f32.gmra.mrb[36].mxu0 %v398_v17  ;;  %v400_v23 = vmax.f32 %v270_v18, 0.0 }
  0xef   :  { %v4153_v21 = vpop.f32.mrb[8].mxu0  ;;  %v399_v22 = vmax.f32 %v265_v20, 0.0 }
  0xf0   :  { %v280_v24 = vadd.f32 %v4153_v21, %v4714_v62  ;;  %v274_v25 = vpop.f32.mrb[9].mxu0 }
  0xf1   :  { %v275_v26 = vadd.f32 %v4714_v62, %v274_v25  ;;  %4228 = vmatprep.mubr.f32.mxu1 %v399_v22 }
  0xf2   :  { %4229 = vmatmul.mubr.f32.vlgmr.msra.gmra.mrb[0].mxu1 %v400_v23  ;;  %v402_v29 = vmax.f32 %v280_v24, 0.0 }
  0xf3   :  { %v401_v27 = vmax.f32 %v275_v26, 0.0  ;;  %v4156_v28 = vpop.f32.mrb[10].mxu0 }
  0xf4   :  { %v290_v30 = vadd.f32 %v4156_v28, %v4714_v62  ;;  %v284_v31 = vpop.f32.mrb[11].mxu0 }
  0xf5   :  { %v285_v32 = vadd.f32 %v4714_v62, %v284_v31  ;;  %4231 = vmatprep.mubr.f32.mxu1 %v401_v27 }
  0xf6   :  { %4232 = vmatmul.mubr.f32.gmra.mrb[2].mxu1 %v402_v29  ;;  %v404_v35 = vmax.f32 %v290_v30, 0.0 }
  0xf7   :  { %v403_v33 = vmax.f32 %v285_v32, 0.0  ;;  %v4159_v34 = vpop.f32.mrb[12].mxu0  ;;  %v4751_v32 = vld [vmem:[%s5802_s4] ss:$0 sm:$0xff] }
  0xf8   :  { %v300_v36 = vadd.f32 %v4159_v34, %v4714_v62  ;;  %v294_v37 = vpop.f32.mrb[13].mxu0 }
  0xf9   :  { %v295_v38 = vadd.f32 %v4714_v62, %v294_v37  ;;  %4234 = vmatprep.mubr.f32.mxu1 %v403_v33 }
  0xfa   :  { %4235 = vmatmul.mubr.f32.gmra.mrb[4].mxu1 %v404_v35  ;;  %v406_v41 = vmax.f32 %v300_v36, 0.0 }
  0xfb   :  { %v405_v39 = vmax.f32 %v295_v38, 0.0  ;;  %v4162_v40 = vpop.f32.mrb[14].mxu0 }
  0xfc   :  { %v310_v42 = vadd.f32 %v4162_v40, %v4714_v62  ;;  %v304_v43 = vpop.f32.mrb[15].mxu0 }
  0xfd   :  { %v305_v44 = vadd.f32 %v4714_v62, %v304_v43  ;;  %4237 = vmatprep.mubr.f32.mxu1 %v405_v39 }
  0xfe   :  { %4238 = vmatmul.mubr.f32.gmra.mrb[6].mxu1 %v406_v41  ;;  %v408_v47 = vmax.f32 %v310_v42, 0.0 }
  0xff   :  { %v407_v45 = vmax.f32 %v305_v44, 0.0  ;;  %v4165_v46 = vpop.f32.mrb[16].mxu0 }
 0x100   :  { %v320_v48 = vadd.f32 %v4165_v46, %v4714_v62  ;;  %v314_v49 = vpop.f32.mrb[17].mxu0 }
 0x101   :  { %v315_v50 = vadd.f32 %v4714_v62, %v314_v49  ;;  %4240 = vmatprep.mubr.f32.mxu1 %v407_v45 }
 0x102   :  { %4241 = vmatmul.mubr.f32.gmra.mrb[8].mxu1 %v408_v47  ;;  %v410_v53 = vmax.f32 %v320_v48, 0.0 }
 0x103   :  { %v409_v51 = vmax.f32 %v315_v50, 0.0  ;;  %v4168_v52 = vpop.f32.mrb[18].mxu0 }
 0x104   :  { %v330_v54 = vadd.f32 %v4168_v52, %v4714_v62  ;;  %v324_v55 = vpop.f32.mrb[19].mxu0 }
 0x105   :  { %v325_v56 = vadd.f32 %v4714_v62, %v324_v55  ;;  %4243 = vmatprep.mubr.f32.mxu1 %v409_v51 }
 0x106   :  { %4244 = vmatmul.mubr.f32.gmra.mrb[10].mxu1 %v410_v53  ;;  %v412_v59 = vmax.f32 %v330_v54, 0.0 }
 0x107   :  { %v411_v57 = vmax.f32 %v325_v56, 0.0  ;;  %v4171_v58 = vpop.f32.mrb[20].mxu0 }
 0x108   :  { %v340_v60 = vadd.f32 %v4171_v58, %v4714_v62  ;;  %v334_v61 = vpop.f32.mrb[21].mxu0 }
 0x109   :  { %v335_v63 = vadd.f32 %v4714_v62, %v334_v61  ;;  %4246 = vmatprep.mubr.f32.mxu1 %v411_v57 }
 0x10a   :  { %4247 = vmatmul.mubr.f32.gmra.mrb[12].mxu1 %v412_v59  ;;  %v414_v2 = vmax.f32 %v340_v60, 0.0 }
 0x10b   :  { %v413_v0 = vmax.f32 %v335_v63, 0.0  ;;  %v4174_v1 = vpop.f32.mrb[22].mxu0 }
 0x10c   :  { %v350_v3 = vadd.f32 %v4174_v1, %v4714_v62  ;;  %v344_v4 = vpop.f32.mrb[23].mxu0 }
 0x10d   :  { %v345_v5 = vadd.f32 %v4714_v62, %v344_v4  ;;  %4249 = vmatprep.mubr.f32.mxu1 %v413_v0 }
 0x10e   :  { %v416_v6 = vmax.f32 %v350_v3, 0.0  ;;  %4250 = vmatmul.mubr.f32.gmra.mrb[14].mxu1 %v414_v2 }
 0x10f   :  { %v415_v7 = vmax.f32 %v345_v5, 0.0  ;;  %v4177_v8 = vpop.f32.mrb[24].mxu0 }
 0x110   :  { %v360_v9 = vadd.f32 %v4177_v8, %v4714_v62  ;;  %v354_v10 = vpop.f32.mrb[25].mxu0 }
 0x111   :  { %4252 = vmatprep.mubr.f32.mxu1 %v415_v7  ;;  %v355_v11 = vadd.f32 %v4714_v62, %v354_v10 }
 0x112   :  { %4253 = vmatmul.mubr.f32.gmra.mrb[16].mxu1 %v416_v6  ;;  %v418_v12 = vmax.f32 %v360_v9, 0.0 }
 0x113   :  { %v417_v13 = vmax.f32 %v355_v11, 0.0  ;;  %v4180_v14 = vpop.f32.mrb[26].mxu0 }
 0x114   :  { %v370_v15 = vadd.f32 %v4180_v14, %v4714_v62  ;;  %v364_v16 = vpop.f32.mrb[27].mxu0 }
 0x115   :  { %4255 = vmatprep.mubr.f32.mxu1 %v417_v13  ;;  %v365_v17 = vadd.f32 %v4714_v62, %v364_v16 }
 0x116   :  { %4256 = vmatmul.mubr.f32.gmra.mrb[18].mxu1 %v418_v12  ;;  %v420_v18 = vmax.f32 %v370_v15, 0.0 }
 0x117   :  { %v419_v19 = vmax.f32 %v365_v17, 0.0  ;;  %v4183_v20 = vpop.f32.mrb[28].mxu0 }
 0x118   :  { %v380_v21 = vadd.f32 %v4183_v20, %v4714_v62  ;;  %v374_v22 = vpop.f32.mrb[29].mxu0 }
 0x119   :  { %4258 = vmatprep.mubr.f32.mxu1 %v419_v19  ;;  %v375_v23 = vadd.f32 %v4714_v62, %v374_v22 }
 0x11a   :  { %4259 = vmatmul.mubr.f32.gmra.mrb[20].mxu1 %v420_v18  ;;  %v422_v24 = vmax.f32 %v380_v21, 0.0 }
 0x11b   :  { %v421_v25 = vmax.f32 %v375_v23, 0.0  ;;  %v4186_v26 = vpop.f32.mrb[30].mxu0 }
 0x11c   :  { %v390_v27 = vadd.f32 %v4186_v26, %v4714_v62  ;;  %v384_v28 = vpop.f32.mrb[31].mxu0 }
 0x11d   :  { %4261 = vmatprep.mubr.f32.mxu1 %v421_v25  ;;  %v385_v29 = vadd.f32 %v4714_v62, %v384_v28  ;;  %v4758_v62 = vld [vmem:[%s5803_s5] ss:$0 sm:$0xff] }
 0x11e   :  { %v424_v30 = vmax.f32 %v390_v27, 0.0  ;;  %4262 = vmatmul.mubr.f32.gmra.mrb[22].mxu1 %v422_v24 }
 0x11f   :  { %v423_v31 = vmax.f32 %v385_v29, 0.0 }
 0x121   :  { %4264 = vmatprep.mubr.f32.mxu1 %v423_v31 }
 0x122   :  { %4265 = vmatmul.mubr.f32.gmra.mrb[24].mxu1 %v424_v30 }
 0x1b9   :  { %v4221_v33 = vpop.f32.mrb[32].mxu0 }
 0x1ba   :  { %v520_v34 = vadd.f32 %v4221_v33, %v4751_v32  ;;  %v514_v35 = vpop.f32.mrb[33].mxu0 }
 0x1bb   :  { %v515_v36 = vadd.f32 %v4751_v32, %v514_v35 }
 0x1bc   :  { %v674_v37 = vmax.f32 %v520_v34, 0.0 }
 0x1bd   :  { %v673_v38 = vmax.f32 %v515_v36, 0.0  ;;  %v4224_v39 = vpop.f32.mrb[34].mxu0 }
 0x1be   :  { %v530_v40 = vadd.f32 %v4224_v39, %v4751_v32  ;;  %v524_v41 = vpop.f32.mrb[35].mxu0  ;;  %v713_v42 = vmul.f32 %v4758_v62, %v674_v37 }
 0x1bf   :  { %v525_v43 = vadd.f32 %v4751_v32, %v524_v41  ;;  %v712_v46 = vmul.f32 %v4758_v62, %v673_v38 }
 0x1c0   :  { %v676_v44 = vmax.f32 %v530_v40, 0.0  ;;  %v748_v45 = vsel %vm744_vm1, %v713_v42, 0.0 }
 0x1c1   :  { %v675_v47 = vmax.f32 %v525_v43, 0.0  ;;  %749 = vadd.xlane.f32.xlu0 %v748_v45  ;;  %v4227_v48 = vpop.f32.mrb[36].mxu0  ;;  %v745_v56 = vsel %vm744_vm1, %v712_v46, 0.0 }
 0x1c2   :  { %v540_v49 = vadd.f32 %v4227_v48, %v4751_v32  ;;  %v534_v50 = vpop.f32.mrb[37].mxu0  ;;  %v715_v51 = vmul.f32 %v4758_v62, %v676_v44 }
 0x1c3   :  { %v535_v52 = vadd.f32 %v4751_v32, %v534_v50  ;;  %v714_v53 = vmul.f32 %v4758_v62, %v675_v47 }
 0x1c4   :  { %v678_v54 = vmax.f32 %v540_v49, 0.0  ;;  %v754_v55 = vsel %vm744_vm1, %v715_v51, 0.0 }
 0x1c5   :  { %v677_v57 = vmax.f32 %v535_v52, 0.0  ;;  %v4230_v58 = vpop.f32.mrb[0].mxu1  ;;  %755 = vadd.xlane.f32.xlu1 %v754_v55  ;;  %746 = vadd.xlane.f32.xlu0 %v745_v56  ;;  %v751_v63 = vsel %vm744_vm1, %v714_v53, 0.0 }
 0x1c6   :  { %v550_v59 = vadd.f32 %v4230_v58, %v4751_v32  ;;  %v544_v60 = vpop.f32.mrb[1].mxu1  ;;  %v717_v61 = vmul.f32 %v4758_v62, %v678_v54 }
 0x1c7   :  { %v545_v1 = vadd.f32 %v4751_v32, %v544_v60  ;;  %v716_v3 = vmul.f32 %v4758_v62, %v677_v57 }
 0x1c8   :  { %v680_v0 = vmax.f32 %v550_v59, 0.0  ;;  %v760_v2 = vsel %vm744_vm1, %v717_v61, 0.0 }
 0x1c9   :  { %v4233_v4 = vpop.f32.mrb[2].mxu1  ;;  %752 = vadd.xlane.f32.xlu1 %v751_v63  ;;  %761 = vadd.xlane.f32.xlu0 %v760_v2  ;;  %v679_v6 = vmax.f32 %v545_v1, 0.0  ;;  %v757_v8 = vsel %vm744_vm1, %v716_v3, 0.0 }
 0x1ca   :  { %v554_v5 = vpop.f32.mrb[3].mxu1  ;;  %v560_v7 = vadd.f32 %v4233_v4, %v4751_v32  ;;  %v719_v9 = vmul.f32 %v4758_v62, %v680_v0 }
 0x1cb   :  { %v555_v13 = vadd.f32 %v4751_v32, %v554_v5  ;;  %v718_v15 = vmul.f32 %v4758_v62, %v679_v6 }
 0x1cc   :  { %v682_v12 = vmax.f32 %v560_v7, 0.0  ;;  %v766_v14 = vsel %vm744_vm1, %v719_v9, 0.0 }
 0x1cd   :  { %v4236_v10 = vpop.f32.mrb[4].mxu1  ;;  %758 = vadd.xlane.f32.xlu0 %v757_v8  ;;  %v681_v18 = vmax.f32 %v555_v13, 0.0  ;;  %v763_v20 = vsel %vm744_vm1, %v718_v15, 0.0 }
 0x1ce   :  { %v564_v11 = vpop.f32.mrb[5].mxu1  ;;  %v570_v19 = vadd.f32 %v4236_v10, %v4751_v32  ;;  %v721_v21 = vmul.f32 %v4758_v62, %v682_v12 }
 0x1cf   :  { %v565_v25 = vadd.f32 %v4751_v32, %v564_v11  ;;  %v720_v27 = vmul.f32 %v4758_v62, %v681_v18 }
 0x1d0   :  { %v684_v24 = vmax.f32 %v570_v19, 0.0  ;;  %v772_v26 = vsel %vm744_vm1, %v721_v21, 0.0 }
 0x1d1   :  { %v4239_v16 = vpop.f32.mrb[6].mxu1  ;;  %767 = vadd.xlane.f32.xlu0 %v766_v14  ;;  %v683_v33 = vmax.f32 %v565_v25, 0.0  ;;  %v769_v35 = vsel %vm744_vm1, %v720_v27, 0.0 }
 0x1d2   :  { %v574_v17 = vpop.f32.mrb[7].mxu1  ;;  %v723_v36 = vmul.f32 %v4758_v62, %v684_v24  ;;  %v580_v60 = vadd.f32 %v4239_v16, %v4751_v32 }
 0x1d3   :  { %v722_v46 = vmul.f32 %v4758_v62, %v683_v33  ;;  %v575_v51 = vadd.f32 %v4751_v32, %v574_v17 }
 0x1d4   :  { %v778_v45 = vsel %vm744_vm1, %v723_v36, 0.0  ;;  %v686_v9 = vmax.f32 %v580_v60, 0.0 }
 0x1d5   :  { %v4786_v22 = vpop.f32.mrb[8].mxu1  ;;  %764 = vadd.xlane.f32.xlu0 %v763_v20  ;;  %v775_v57 = vsel %vm744_vm1, %v722_v46, 0.0  ;;  %v685_v1 = vmax.f32 %v575_v51, 0.0 }
 0x1d6   :  { %v584_v23 = vpop.f32.mrb[9].mxu1  ;;  %v590_v19 = vadd.f32 %v4786_v22, %v4751_v32  ;;  %v725_v20 = vmul.f32 %v4758_v62, %v686_v9 }
 0x1d7   :  { %v585_v11 = vadd.f32 %v4751_v32, %v584_v23  ;;  %v724_v13 = vmul.f32 %v4758_v62, %v685_v1  ;;  %v4480_v1 = vmov 0  }
 0x1d8   :  { %4326 = vset.pattern.permute.xlu1 %v4480_v1  ;;  %4327 = vset.pattern.permute.xlu0 %v4480_v1 }
 0x1d9   :  { %v4245_v28 = vpop.f32.mrb[10].mxu1  ;;  %773 = vadd.xlane.f32.xlu0 %v772_v26  ;;  %v687_v24 = vmax.f32 %v585_v11, 0.0  ;;  %v781_v26 = vsel %vm744_vm1, %v724_v13, 0.0 }
 0x1da   :  { %v600_v29 = vadd.f32 %v4245_v28, %v4751_v32  ;;  %v594_v30 = vpop.f32.mrb[11].mxu1 }
 0x1db   :  { %v595_v31 = vadd.f32 %v4751_v32, %v594_v30 }
 0x1dc   :  { %v690_v34 = vmax.f32 %v600_v29, 0.0 }
 0x1dd   :  { %v4248_v37 = vpop.f32.mrb[12].mxu1  ;;  %770 = vadd.xlane.f32.xlu0 %v769_v35  ;;  %v689_v41 = vmax.f32 %v595_v31, 0.0  ;;  %v784_v35 = vsel %vm744_vm1, %v725_v20, 0.0 }
 0x1de   :  { %v610_v38 = vadd.f32 %v4248_v37, %v4751_v32  ;;  %v604_v39 = vpop.f32.mrb[13].mxu1  ;;  %v729_v40 = vmul.f32 %v4758_v62, %v690_v34  ;;  %v688_v34 = vmax.f32 %v590_v19, 0.0 }
 0x1df   :  { %v605_v42 = vadd.f32 %v4751_v32, %v604_v39  ;;  %v728_v54 = vmul.f32 %v4758_v62, %v689_v41 }
 0x1e0   :  { %v692_v43 = vmax.f32 %v610_v38, 0.0  ;;  %v796_v44 = vsel %vm744_vm1, %v729_v40, 0.0  ;;  %v726_v40 = vmul.f32 %v4758_v62, %v687_v24 }
 0x1e1   :  { %v4251_v47 = vpop.f32.mrb[14].mxu1  ;;  %797 = vadd.xlane.f32.xlu1 %v796_v44  ;;  %779 = vadd.xlane.f32.xlu0 %v778_v45  ;;  %v691_v52 = vmax.f32 %v605_v42, 0.0  ;;  %v793_v2 = vsel %vm744_vm1, %v728_v54, 0.0  ;;  %v727_v54 = vmul.f32 %v4758_v62, %v688_v34  ;;  %v1099_v34 = vlaneseq }
 0x1e2   :  { %v620_v48 = vadd.f32 %v4251_v47, %v4751_v32  ;;  %v614_v49 = vpop.f32.mrb[15].mxu1  ;;  %v731_v50 = vmul.f32 %v4758_v62, %v692_v43 }
 0x1e3   :  { %v615_v53 = vadd.f32 %v4751_v32, %v614_v49  ;;  %v730_v3 = vmul.f32 %v4758_v62, %v691_v52 }
 0x1e4   :  { %v694_v55 = vmax.f32 %v620_v48, 0.0  ;;  %v802_v56 = vsel %vm744_vm1, %v731_v50, 0.0 }
 0x1e5   :  { %v693_v58 = vmax.f32 %v615_v53, 0.0  ;;  %803 = vadd.xlane.f32.xlu1 %v802_v56  ;;  %776 = vadd.xlane.f32.xlu0 %v775_v57  ;;  %v4254_v59 = vpop.f32.mrb[16].mxu1  ;;  %v799_v12 = vsel %vm744_vm1, %v730_v3, 0.0  ;;  %v787_v53 = vsel %vm744_vm1, %v726_v40, 0.0  ;;  %v790_v3 = vsel %vm744_vm1, %v727_v54, 0.0 }
 0x1e6   :  { %v630_v61 = vadd.f32 %v4254_v59, %v4751_v32  ;;  %v624_v63 = vpop.f32.mrb[17].mxu1  ;;  %v733_v0 = vmul.f32 %v4758_v62, %v694_v55 }
 0x1e7   :  { %v625_v5 = vadd.f32 %v4751_v32, %v624_v63  ;;  %v732_v7 = vmul.f32 %v4758_v62, %v693_v58 }
 0x1e8   :  { %v696_v4 = vmax.f32 %v630_v61, 0.0  ;;  %v808_v6 = vsel %vm744_vm1, %v733_v0, 0.0 }
 0x1e9   :  { %809 = vadd.xlane.f32.xlu1 %v808_v6  ;;  %794 = vadd.xlane.f32.xlu0 %v793_v2  ;;  %v4257_v8 = vpop.f32.mrb[18].mxu1  ;;  %v695_v14 = vmax.f32 %v625_v5, 0.0  ;;  %v805_v15 = vsel %vm744_vm1, %v732_v7, 0.0 }
 0x1ea   :  { %v634_v10 = vpop.f32.mrb[19].mxu1  ;;  %v640_v16 = vadd.f32 %v4257_v8, %v4751_v32  ;;  %v735_v17 = vmul.f32 %v4758_v62, %v696_v4 }
 0x1eb   :  { %v635_v25 = vadd.f32 %v4751_v32, %v634_v10  ;;  %v734_v30 = vmul.f32 %v4758_v62, %v695_v14 }
 0x1ec   :  { %v698_v28 = vmax.f32 %v640_v16, 0.0  ;;  %v814_v29 = vsel %vm744_vm1, %v735_v17, 0.0 }
 0x1ed   :  { %806 = vadd.xlane.f32.xlu1 %v805_v15  ;;  %800 = vadd.xlane.f32.xlu0 %v799_v12  ;;  %v4260_v18 = vpop.f32.mrb[20].mxu1  ;;  %v697_v39 = vmax.f32 %v635_v25, 0.0  ;;  %v811_v43 = vsel %vm744_vm1, %v734_v30, 0.0 }
 0x1ee   :  { %v650_v21 = vadd.f32 %v4260_v18, %v4751_v32  ;;  %v644_v23 = vpop.f32.mrb[21].mxu1  ;;  %v737_v44 = vmul.f32 %v4758_v62, %v698_v28 }
 0x1ef   :  { %v645_v27 = vadd.f32 %v4751_v32, %v644_v23  ;;  %v736_v58 = vmul.f32 %v4758_v62, %v697_v39 }
 0x1f0   :  { %v700_v31 = vmax.f32 %v650_v21, 0.0  ;;  %v820_v57 = vsel %vm744_vm1, %v737_v44, 0.0  ;;  %v4481_v44 = vmov 1966171168  }
 0x1f1   :  { %815 = vadd.xlane.f32.xlu1 %v814_v29  ;;  %782 = vadd.xlane.f32.xlu0 %v781_v26  ;;  %v699_v22 = vmax.f32 %v645_v27, 0.0  ;;  %v4263_v33 = vpop.f32.mrb[22].mxu1  ;;  %v817_v2 = vsel %vm744_vm1, %v736_v58, 0.0 }
 0x1f2   :  { %v660_v36 = vadd.f32 %v4263_v33, %v4751_v32  ;;  %v654_v37 = vpop.f32.mrb[23].mxu1  ;;  %v739_v38 = vmul.f32 %v4758_v62, %v700_v31 }
 0x1f3   :  { %v655_v41 = vadd.f32 %v4751_v32, %v654_v37  ;;  %v738_v42 = vmul.f32 %v4758_v62, %v699_v22 }
 0x1f4   :  { %v702_v45 = vmax.f32 %v660_v36, 0.0  ;;  %v826_v46 = vsel %vm744_vm1, %v739_v38, 0.0 }
 0x1f5   :  { %812 = vadd.xlane.f32.xlu1 %v811_v43  ;;  %785 = vadd.xlane.f32.xlu0 %v784_v35  ;;  %v701_v47 = vmax.f32 %v655_v41, 0.0  ;;  %v4266_v48 = vpop.f32.mrb[24].mxu1  ;;  %v823_v49 = vsel %vm744_vm1, %v738_v42, 0.0  ;;  %v4871_v41 = vshrl.u32 %v1099_v34, 7 }
 0x1f6   :  { %v670_v50 = vadd.f32 %v4266_v48, %v4751_v32  ;;  %v664_v51 = vpop.f32.mrb[25].mxu1  ;;  %v741_v52 = vmul.f32 %v4758_v62, %v702_v45  ;;  %v2128_v45 = vunpack.c.l.s4 %v4481_v44 }
 0x1f7   :  { %v665_v55 = vadd.f32 %v4751_v32, %v664_v51  ;;  %v740_v56 = vmul.f32 %v4758_v62, %v701_v47 }
 0x1f8   :  { %v704_v59 = vmax.f32 %v670_v50, 0.0  ;;  %v832_v60 = vsel %vm744_vm1, %v741_v52, 0.0  ;;  %v4875_v52 = vsub.s32 0, %v4871_v41 }
 0x1f9   :  { %821 = vadd.xlane.f32.xlu1 %v820_v57  ;;  %788 = vadd.xlane.f32.xlu0 %v787_v53  ;;  %v703_v61 = vmax.f32 %v665_v55, 0.0  ;;  %v829_v63 = vsel %vm744_vm1, %v740_v56, 0.0  ;;  %v4878_v55 = vsub.s32 1, %v4871_v41  ;;  %v2129_v56 = vunpack.c.0.s8 %v2128_v45 }
 0x1fa   :  { %v743_v0 = vmul.f32 %v4758_v62, %v704_v59  ;;  %v4881_v59 = vsub.s32 2, %v4871_v41 }
 0x1fb   :  { %v742_v32 = vmul.f32 %v4758_v62, %v703_v61  ;;  %v4860_v62 = vstv %s5804_s6  ;;  %v4884_v61 = vsub.s32 3, %v4871_v41  ;;  %s4482_s6 = smov [#allocation3]  }
 0x1fc   :  { %v838_v4 = vsel %vm744_vm1, %v743_v0, 0.0  ;;  %v4890_v0 = vsub.s32 5, %v4871_v41  ;;  %s4004_s11 = sshll.u32 %s4482_s6, 4  ;;  %s4005_s11 = int_to_ptr.vmem [resolvable:$true] %s4004_s11 }
 0x1fd   :  { %818 = vadd.xlane.f32.xlu1 %v817_v2  ;;  %791 = vadd.xlane.f32.xlu0 %v790_v3  ;;  %v835_v5 = vsel %vm744_vm1, %v742_v32, 0.0  ;;  %v4894_v3 = vsub.s32 6, %v4871_v41  ;;  %vm3995_vm1 = vcmp.lt.s32.totalorder %v1099_v34, 256  ;;  %s4456_s12 = scalar_lea.vmem %s4005_s11, 32  ;;  %p4461_p1 = scmp.lt.s32.totalorder %s4005_s11, %s4005_s11 }
 0x1fe   :  { %p4457_p0 = scmp.ne.s32.totalorder %s4005_s11, %s4456_s12  ;;  %p4462_p2 = scmp.lt.s32.totalorder %s4456_s12, %s4456_s12 }
 0x200   :  { %p4463_p3 = por %p4462_p2, %p4461_p1 }
 0x201   :  { %827 = vadd.xlane.f32.xlu1 %v826_v46 }
 0x202   :  { %p4464_p4 = pnand %p4463_p3, %p4457_p0 }
 0x205   :  { %824 = vadd.xlane.f32.xlu1 %v823_v49 }
 0x209   :  { %833 = vadd.xlane.f32.xlu1 %v832_v60 }
 0x20d   :  { %830 = vadd.xlane.f32.xlu1 %v829_v63  ;;  %v4887_v63 = vsub.s32 4, %v4871_v41 }
 0x211   :  { %836 = vadd.xlane.f32.xlu1 %v835_v5 }
 0x215   :  { %839 = vadd.xlane.f32.xlu1 %v838_v4 }
 0x24e   :  { %v750_v6 = vpop.xlane.xlu0 %749 }
 0x24f   :  { %v844_v7 = vadd.f32 %v4860_v62, %v750_v6  ;;  %v4897_v6 = vsub.s32 7, %v4871_v41 }
 0x251   :  { %v876_v8 = vsub.f32 0.0, %v844_v7  ;;  %v4900_v7 = vsub.s32 %v2129_v56, %v4871_v41 }
 0x252   :  { %v756_v9 = vpop.xlane.xlu1 %755  ;;  %v747_v10 = vpop.xlane.xlu0 %746 }
 0x253   :  { %v909_v11 = vmul.f32 1.442695, %v876_v8  ;;  %v846_v12 = vadd.f32 %v4860_v62, %v756_v9  ;;  %v843_v13 = vadd.f32 %v4860_v62, %v747_v10 }
 0x255   :  { %4328 = vpow2.f32 %v909_v11  ;;  %v878_v14 = vsub.f32 0.0, %v846_v12  ;;  %v875_v15 = vsub.f32 0.0, %v843_v13 }
 0x256   :  { %v753_v16 = vpop.xlane.xlu1 %752  ;;  %v762_v17 = vpop.xlane.xlu0 %761 }
 0x257   :  { %v913_v18 = vmul.f32 1.442695, %v878_v14  ;;  %v907_v19 = vmul.f32 1.442695, %v875_v15  ;;  %v845_v20 = vadd.f32 %v4860_v62, %v753_v16  ;;  %v848_v21 = vadd.f32 %v4860_v62, %v762_v17 }
 0x259   :  { %4330 = vpow2.f32 %v913_v18  ;;  %v877_v23 = vsub.f32 0.0, %v845_v20  ;;  %v880_v24 = vsub.f32 0.0, %v848_v21 }
 0x25a   :  { %4332 = vpow2.f32 %v907_v19  ;;  %v759_v25 = vpop.xlane.xlu0 %758 }
 0x25b   :  { %v911_v26 = vmul.f32 1.442695, %v877_v23  ;;  %v917_v27 = vmul.f32 1.442695, %v880_v24  ;;  %v847_v28 = vadd.f32 %v4860_v62, %v759_v25 }
 0x25d   :  { %4334 = vpow2.f32 %v911_v26  ;;  %v879_v29 = vsub.f32 0.0, %v847_v28 }
 0x25e   :  { %4336 = vpow2.f32 %v917_v27  ;;  %v768_v30 = vpop.xlane.xlu0 %767 }
 0x25f   :  { %v4329_v31 = vpop.eup %4328  ;;  %v915_v22 = vmul.f32 1.442695, %v879_v29  ;;  %v850_v33 = vadd.f32 %v4860_v62, %v768_v30 }
 0x260   :  { %v972_v35 = vadd.f32 1.0, %v4329_v31 }
 0x261   :  { %4338 = vpow2.f32 %v915_v22  ;;  %v882_v36 = vsub.f32 0.0, %v850_v33 }
 0x262   :  { %4340 = vrcp.f32 %v972_v35  ;;  %v765_v37 = vpop.xlane.xlu0 %764 }
 0x263   :  { %v4331_v38 = vpop.eup %4330  ;;  %v921_v39 = vmul.f32 1.442695, %v882_v36  ;;  %v849_v40 = vadd.f32 %v4860_v62, %v765_v37 }
 0x264   :  { %v4333_v42 = vpop.eup %4332  ;;  %v974_v43 = vadd.f32 1.0, %v4331_v38 }
 0x265   :  { %4342 = vpow2.f32 %v921_v39  ;;  %v881_v46 = vsub.f32 0.0, %v849_v40  ;;  %v971_v47 = vadd.f32 1.0, %v4333_v42 }
 0x266   :  { %v774_v48 = vpop.xlane.xlu0 %773  ;;  %4344 = vrcp.f32 %v974_v43 }
 0x267   :  { %v4335_v49 = vpop.eup %4334  ;;  %v919_v50 = vmul.f32 1.442695, %v881_v46  ;;  %v852_v51 = vadd.f32 %v4860_v62, %v774_v48 }
 0x268   :  { %v4337_v53 = vpop.eup %4336  ;;  %v973_v54 = vadd.f32 1.0, %v4335_v49 }
 0x269   :  { %v976_v57 = vadd.f32 1.0, %v4337_v53  ;;  %4346 = vpow2.f32 %v919_v50  ;;  %v884_v58 = vsub.f32 0.0, %v852_v51 }
 0x26a   :  { %4348 = vrcp.f32 %v971_v47  ;;  %v771_v60 = vpop.xlane.xlu0 %770 }
 0x26b   :  { %v4339_v1 = vpop.eup %4338  ;;  %4350 = vrcp.f32 %v973_v54  ;;  %v925_v32 = vmul.f32 1.442695, %v884_v58  ;;  %v851_v2 = vadd.f32 %v4860_v62, %v771_v60 }
 0x26c   :  { %v4341_v4 = vpop.eup %4340  ;;  %4352 = vrcp.f32 %v976_v57  ;;  %v975_v5 = vadd.f32 1.0, %v4339_v1 }
 0x26d   :  { %4354 = vpow2.f32 %v925_v32  ;;  %v883_v8 = vsub.f32 0.0, %v851_v2  ;;  %v1134_v9 = vrot.slane %v4341_v4, %v4875_v52  ;;  %v1138_v10 = vrot.slane %v4341_v4, %v4878_v55 }
 0x26e   :  { %4356 = vrcp.f32 %v975_v5  ;;  %v798_v11 = vpop.xlane.xlu1 %797  ;;  %v780_v12 = vpop.xlane.xlu0 %779  ;;  %v1142_v13 = vrot.slane %v4341_v4, %v4881_v59  ;;  %v1146_v14 = vrot.slane %v4341_v4, %v4884_v61  ;;  %v1150_v15 = vrot.slane %v4341_v4, %v4887_v63 }
 0x26f   :  { %v4343_v16 = vpop.eup %4342  ;;  %v923_v17 = vmul.f32 1.442695, %v883_v8  ;;  %v860_v18 = vadd.f32 %v4860_v62, %v798_v11  ;;  %v854_v19 = vadd.f32 %v4860_v62, %v780_v12  ;;  %v1154_v20 = vrot.slane %v4341_v4, %v4890_v0 }
 0x270   :  { %v978_v21 = vadd.f32 1.0, %v4343_v16  ;;  %v1158_v23 = vrot.slane %v4341_v4, %v4894_v3  ;;  %v1162_v24 = vrot.slane %v4341_v4, %v4897_v6  ;;  %v2172_v25 = vcombine.low %v1134_v9, %v1138_v10  ;;  %v4912_v29 = vpop.eup %4344 }
 0x271   :  { %4358 = vpow2.f32 %v923_v17  ;;  %v892_v26 = vsub.f32 0.0, %v860_v18  ;;  %v886_v27 = vsub.f32 0.0, %v854_v19  ;;  %v2173_v28 = vcombine.low %v1142_v13, %v1146_v14 }
 0x272   :  { %4360 = vrcp.f32 %v978_v21  ;;  %v804_v30 = vpop.xlane.xlu1 %803  ;;  %v777_v31 = vpop.xlane.xlu0 %776  ;;  %v2174_v22 = vcombine.low %v1150_v15, %v1154_v20  ;;  %v2175_v33 = vcombine.low %v1158_v23, %v1162_v24  ;;  %v2182_v35 = vrot.slane %v2172_v25, %v4900_v7 }
 0x273   :  { %v4347_v36 = vpop.eup %4346  ;;  %v941_v37 = vmul.f32 1.442695, %v892_v26  ;;  %v929_v38 = vmul.f32 1.442695, %v886_v27  ;;  %v862_v39 = vadd.f32 %v4860_v62, %v804_v30  ;;  %v853_v40 = vadd.f32 %v4860_v62, %v777_v31 }
 0x274   :  { %v4917_v42 = vpop.eup %4348  ;;  %v977_v43 = vadd.f32 1.0, %v4347_v36  ;;  %v2189_v44 = vrot.slane %v2173_v28, %v4900_v7  ;;  %v2196_v45 = vrot.slane %v2174_v22, %v4900_v7  ;;  %v2203_v46 = vrot.slane %v2175_v33, %v4900_v7 }
 0x275   :  { %v4922_v47 = vpop.eup %4350  ;;  %4362 = vpow2.f32 %v941_v37  ;;  %v894_v48 = vsub.f32 0.0, %v862_v39  ;;  %v885_v49 = vsub.f32 0.0, %v853_v40  ;;  %v1198_v50 = vrot.slane %v4912_v29, %v4875_v52 }
 0x276   :  { %v4926_v51 = vpop.eup %4352  ;;  %4364 = vrcp.f32 %v977_v43  ;;  %v810_v53 = vpop.xlane.xlu1 %809  ;;  %v2204_v56 = vcombine.low %v2182_v35, %v2189_v44  ;;  %v2205_v57 = vcombine.low %v2196_v45, %v2203_v46  ;;  %v1202_v58 = vrot.slane %v4912_v29, %v4878_v55 }
 0x277   :  { %v795_v54 = vpop.xlane.xlu0 %794  ;;  %v4355_v60 = vpop.eup %4354  ;;  %4366 = vpow2.f32 %v929_v38  ;;  %v945_v1 = vmul.f32 1.442695, %v894_v48  ;;  %v927_v32 = vmul.f32 1.442695, %v885_v49  ;;  %v864_v2 = vadd.f32 %v4860_v62, %v810_v53 }
 0x278   :  { %v4931_v4 = vpop.eup %4356  ;;  %v980_v5 = vadd.f32 1.0, %v4355_v60  ;;  %v859_v8 = vadd.f32 %v4860_v62, %v795_v54  ;;  %v2212_v9 = vrot.slane %v2204_v56, %v4900_v7  ;;  %v2219_v10 = vrot.slane %v2205_v57, %v4900_v7 }
 0x279   :  { %4368 = vpow2.f32 %v945_v1  ;;  %v896_v11 = vsub.f32 0.0, %v864_v2  ;;  %v1206_v12 = vrot.slane %v4912_v29, %v4881_v59  ;;  %v1210_v13 = vrot.slane %v4912_v29, %v4884_v61 }
 0x27a   :  { %4370 = vrcp.f32 %v980_v5  ;;  %v891_v14 = vsub.f32 0.0, %v859_v8  ;;  %v2220_v15 = vcombine.low %v2212_v9, %v2219_v10  ;;  %v807_v16 = vpop.xlane.xlu1 %806  ;;  %v1214_v18 = vrot.slane %v4912_v29, %v4887_v63 }
 0x27b   :  { %v801_v17 = vpop.xlane.xlu0 %800  ;;  %v4359_v19 = vpop.eup %4358  ;;  %4372 = vpow2.f32 %v927_v32  ;;  %v949_v20 = vmul.f32 1.442695, %v896_v11  ;;  %v863_v21 = vadd.f32 %v4860_v62, %v807_v16  ;;  %v1218_v27 = vrot.slane %v4912_v29, %v4890_v0 }
 0x27c   :  { %v861_v23 = vadd.f32 %v4860_v62, %v801_v17  ;;  %v4944_v24 = vpop.eup %4360  ;;  %v979_v25 = vadd.f32 1.0, %v4359_v19  ;;  %v939_v26 = vmul.f32 1.442695, %v891_v14  ;;  %3695 = vperm.xlu1 %4326, %v2220_v15   ;;  %v1222_v28 = vrot.slane %v4912_v29, %v4894_v3 }
 0x27d   :  { %4374 = vpow2.f32 %v949_v20  ;;  %v895_v30 = vsub.f32 0.0, %v863_v21  ;;  %v1226_v22 = vrot.slane %v4912_v29, %v4897_v6  ;;  %v2270_v33 = vcombine.low %v1198_v50, %v1202_v58 }
 0x27e   :  { %v893_v31 = vsub.f32 0.0, %v861_v23  ;;  %4376 = vrcp.f32 %v979_v25  ;;  %v2271_v35 = vcombine.low %v1206_v12, %v1210_v13  ;;  %v2272_v36 = vcombine.low %v1214_v18, %v1218_v27  ;;  %v816_v10 = vpop.xlane.xlu1 %815 }
 0x27f   :  { %v4363_v37 = vpop.eup %4362  ;;  %4378 = vpow2.f32 %v939_v26  ;;  %v947_v38 = vmul.f32 1.442695, %v895_v30  ;;  %v2273_v40 = vcombine.low %v1222_v28, %v1226_v22  ;;  %v2280_v45 = vrot.slane %v2270_v33, %v4900_v7  ;;  %v783_v19 = vpop.xlane.xlu0 %782 }
 0x280   :  { %v943_v39 = vmul.f32 1.442695, %v893_v31  ;;  %v4952_v43 = vpop.eup %4364  ;;  %v988_v44 = vadd.f32 1.0, %v4363_v37  ;;  %v2287_v46 = vrot.slane %v2271_v35, %v4900_v7  ;;  %v2294_v48 = vrot.slane %v2272_v36, %v4900_v7 }
 0x281   :  { %v4367_v49 = vpop.eup %4366  ;;  %4380 = vpow2.f32 %v947_v38  ;;  %v2301_v29 = vrot.slane %v2273_v40, %v4900_v7  ;;  %v1102_v50 = vrot.slane %v4917_v42, %v4875_v52  ;;  %v1106_v53 = vrot.slane %v4917_v42, %v4878_v55 }
 0x282   :  { %4382 = vrcp.f32 %v988_v44  ;;  %v982_v54 = vadd.f32 1.0, %v4367_v49  ;;  %v2302_v56 = vcombine.low %v2280_v45, %v2287_v46  ;;  %v1110_v57 = vrot.slane %v4917_v42, %v4881_v59 }
 0x283   :  { %v4369_v58 = vpop.eup %4368  ;;  %4384 = vpow2.f32 %v943_v39  ;;  %v2303_v60 = vcombine.low %v2294_v48, %v2301_v29  ;;  %v1114_v1 = vrot.slane %v4917_v42, %v4884_v61  ;;  %v1118_v32 = vrot.slane %v4917_v42, %v4887_v63 }
 0x284   :  { %v4968_v2 = vpop.eup %4370  ;;  %4386 = vrcp.f32 %v982_v54  ;;  %v990_v5 = vadd.f32 1.0, %v4369_v58  ;;  %v2310_v8 = vrot.slane %v2302_v56, %v4900_v7  ;;  %v1122_v9 = vrot.slane %v4917_v42, %v4890_v0 }
 0x285   :  { %v4373_v11 = vpop.eup %4372  ;;  %v2317_v12 = vrot.slane %v2303_v60, %v4900_v7  ;;  %v1126_v13 = vrot.slane %v4917_v42, %v4894_v3  ;;  %v1130_v14 = vrot.slane %v4917_v42, %v4897_v6  ;;  %v2123_v15 = vcombine.low %v1102_v50, %v1106_v53  ;;  %v813_v60 = vpop.xlane.xlu1 %812 }
 0x286   :  { %4388 = vrcp.f32 %v990_v5  ;;  %v981_v16 = vadd.f32 1.0, %v4373_v11  ;;  %v2124_v17 = vcombine.low %v1110_v57, %v1114_v1  ;;  %v2125_v18 = vcombine.low %v1118_v32, %v1122_v9  ;;  %v786_v9 = vpop.xlane.xlu0 %785 }
 0x287   :  { %v4375_v20 = vpop.eup %4374  ;;  %v2318_v21 = vcombine.low %v2310_v8, %v2317_v12  ;;  %v2126_v23 = vcombine.low %v1126_v13, %v1130_v14  ;;  %v2133_v25 = vrot.slane %v2123_v15, %v4900_v7  ;;  %v866_v26 = vadd.f32 %v4860_v62, %v816_v10 }
 0x288   :  { %v4980_v27 = vpop.eup %4376  ;;  %4390 = vrcp.f32 %v981_v16  ;;  %v992_v28 = vadd.f32 1.0, %v4375_v20  ;;  %v2140_v30 = vrot.slane %v2124_v17, %v4900_v7  ;;  %v2147_v42 = vrot.slane %v2125_v18, %v4900_v7 }
 0x289   :  { %v4379_v31 = vpop.eup %4378  ;;  %3701 = vperm.xlu1 %4326, %v2318_v21   ;;  %v2154_v22 = vrot.slane %v2126_v23, %v4900_v7  ;;  %v898_v33 = vsub.f32 0.0, %v866_v26  ;;  %v855_v35 = vadd.f32 %v4860_v62, %v783_v19  ;;  %v1166_v36 = vrot.slane %v4922_v47, %v4875_v52 }
 0x28a   :  { %4392 = vrcp.f32 %v992_v28  ;;  %v987_v37 = vadd.f32 1.0, %v4379_v31  ;;  %v2155_v38 = vcombine.low %v2133_v25, %v2140_v30  ;;  %v1170_v39 = vrot.slane %v4922_v47, %v4878_v55 }
 0x28b   :  { %v4381_v40 = vpop.eup %4380  ;;  %v2156_v44 = vcombine.low %v2147_v42, %v2154_v22  ;;  %v953_v45 = vmul.f32 1.442695, %v898_v33  ;;  %v887_v46 = vsub.f32 0.0, %v855_v35  ;;  %v1174_v48 = vrot.slane %v4922_v47, %v4881_v59 }
 0x28c   :  { %v4992_v49 = vpop.eup %4382  ;;  %4394 = vrcp.f32 %v987_v37  ;;  %v991_v29 = vadd.f32 1.0, %v4381_v40  ;;  %v2163_v50 = vrot.slane %v2155_v38, %v4900_v7  ;;  %v1178_v53 = vrot.slane %v4922_v47, %v4884_v61 }
 0x28d   :  { %v4385_v54 = vpop.eup %4384  ;;  %v2170_v56 = vrot.slane %v2156_v44, %v4900_v7  ;;  %4396 = vpow2.f32 %v953_v45  ;;  %v931_v57 = vmul.f32 1.442695, %v887_v46  ;;  %v1182_v58 = vrot.slane %v4922_v47, %v4887_v63  ;;  %v822_v45 = vpop.xlane.xlu1 %821 }
 0x28e   :  { %v5000_v1 = vpop.eup %4386  ;;  %4398 = vrcp.f32 %v991_v29  ;;  %v989_v32 = vadd.f32 1.0, %v4385_v54  ;;  %v1186_v5 = vrot.slane %v4922_v47, %v4890_v0  ;;  %v1190_v8 = vrot.slane %v4922_v47, %v4894_v3 }
 0x28f   :  { %v2171_v10 = vcombine.low %v2163_v50, %v2170_v56  ;;  %4400 = vpow2.f32 %v931_v57  ;;  %v1194_v11 = vrot.slane %v4922_v47, %v4897_v6  ;;  %v2221_v12 = vcombine.low %v1166_v36, %v1170_v39 }
 0x290   :  { %v5008_v13 = vpop.eup %4388  ;;  %4402 = vrcp.f32 %v989_v32  ;;  %v2222_v14 = vcombine.low %v1174_v48, %v1178_v53  ;;  %v2223_v15 = vcombine.low %v1182_v58, %v1186_v5  ;;  %v865_v16 = vadd.f32 %v4860_v62, %v813_v60  ;;  %v789_v53 = vpop.xlane.xlu0 %788 }
 0x291   :  { %3692 = vperm.xlu0 %4327, %v2171_v10   ;;  %v2224_v17 = vcombine.low %v1190_v8, %v1194_v11  ;;  %v2231_v18 = vrot.slane %v2221_v12, %v4900_v7  ;;  %v856_v19 = vadd.f32 %v4860_v62, %v786_v9  ;;  %v1262_v20 = vrot.slane %v4926_v51, %v4875_v52 }
 0x292   :  { %v5015_v21 = vpop.eup %4390  ;;  %v2238_v47 = vrot.slane %v2222_v14, %v4900_v7  ;;  %v2245_v23 = vrot.slane %v2223_v15, %v4900_v7  ;;  %v897_v25 = vsub.f32 0.0, %v865_v16  ;;  %v1266_v26 = vrot.slane %v4926_v51, %v4878_v55 }
 0x293   :  { %v2252_v28 = vrot.slane %v2224_v17, %v4900_v7  ;;  %v888_v30 = vsub.f32 0.0, %v856_v19  ;;  %v1270_v42 = vrot.slane %v4926_v51, %v4881_v59  ;;  %v1274_v31 = vrot.slane %v4926_v51, %v4884_v61 }
 0x294   :  { %v5026_v22 = vpop.eup %4392  ;;  %v2253_v33 = vcombine.low %v2231_v18, %v2238_v47  ;;  %v951_v35 = vmul.f32 1.442695, %v897_v25  ;;  %v1278_v36 = vrot.slane %v4926_v51, %v4887_v63  ;;  %v1282_v37 = vrot.slane %v4926_v51, %v4890_v0 }
 0x295   :  { %v2254_v38 = vcombine.low %v2245_v23, %v2252_v28  ;;  %v933_v39 = vmul.f32 1.442695, %v888_v30  ;;  %v1286_v40 = vrot.slane %v4926_v51, %v4894_v3  ;;  %v1290_v44 = vrot.slane %v4926_v51, %v4897_v6 }
 0x296   :  { %v5036_v46 = vpop.eup %4394  ;;  %v2261_v48 = vrot.slane %v2253_v33, %v4900_v7  ;;  %4404 = vpow2.f32 %v951_v35  ;;  %v2368_v29 = vcombine.low %v1262_v20, %v1266_v26  ;;  %v2369_v50 = vcombine.low %v1270_v42, %v1274_v31  ;;  %v819_v35 = vpop.xlane.xlu1 %818 }
 0x297   :  { %v4397_v54 = vpop.eup %4396  ;;  %v2268_v56 = vrot.slane %v2254_v38, %v4900_v7  ;;  %4406 = vpow2.f32 %v933_v39  ;;  %v2370_v57 = vcombine.low %v1278_v36, %v1282_v37  ;;  %v2371_v58 = vcombine.low %v1286_v40, %v1290_v44  ;;  %v792_v36 = vpop.xlane.xlu0 %791 }
 0x298   :  { %v5040_v60 = vpop.eup %4398  ;;  %v994_v32 = vadd.f32 1.0, %v4397_v54  ;;  %v2378_v51 = vrot.slane %v2368_v29, %v4900_v7  ;;  %v2385_v5 = vrot.slane %v2369_v50, %v4900_v7  ;;  %v868_v8 = vadd.f32 %v4860_v62, %v822_v45 }
 0x299   :  { %v4401_v9 = vpop.eup %4400  ;;  %v2269_v10 = vcombine.low %v2261_v48, %v2268_v56  ;;  %v2392_v11 = vrot.slane %v2370_v57, %v4900_v7  ;;  %v2399_v12 = vrot.slane %v2371_v58, %v4900_v7  ;;  %v857_v14 = vadd.f32 %v4860_v62, %v789_v53 }
 0x29a   :  { %v5048_v15 = vpop.eup %4402  ;;  %4408 = vrcp.f32 %v994_v32  ;;  %v983_v16 = vadd.f32 1.0, %v4401_v9  ;;  %v2400_v17 = vcombine.low %v2378_v51, %v2385_v5  ;;  %v900_v18 = vsub.f32 0.0, %v868_v8 }
 0x29b   :  { %3698 = vperm.xlu1 %4326, %v2269_v10   ;;  %v2401_v19 = vcombine.low %v2392_v11, %v2399_v12  ;;  %v889_v20 = vsub.f32 0.0, %v857_v14  ;;  %v1230_v47 = vrot.slane %v4931_v4, %v4875_v52  ;;  %v1234_v23 = vrot.slane %v4931_v4, %v4878_v55 }
 0x29c   :  { %4410 = vrcp.f32 %v983_v16  ;;  %v2408_v25 = vrot.slane %v2400_v17, %v4900_v7  ;;  %v957_v26 = vmul.f32 1.442695, %v900_v18  ;;  %v1238_v28 = vrot.slane %v4931_v4, %v4881_v59 }
 0x29d   :  { %v2415_v30 = vrot.slane %v2401_v19, %v4900_v7  ;;  %v935_v42 = vmul.f32 1.442695, %v889_v20  ;;  %v1242_v31 = vrot.slane %v4931_v4, %v4884_v61  ;;  %v1246_v33 = vrot.slane %v4931_v4, %v4887_v63 }
 0x29e   :  { %4412 = vpow2.f32 %v957_v26  ;;  %v1250_v37 = vrot.slane %v4931_v4, %v4890_v0  ;;  %v1254_v38 = vrot.slane %v4931_v4, %v4894_v3  ;;  %v1258_v39 = vrot.slane %v4931_v4, %v4897_v6 }
 0x29f   :  { %v2416_v40 = vcombine.low %v2408_v25, %v2415_v30  ;;  %4414 = vpow2.f32 %v935_v42  ;;  %v2319_v44 = vcombine.low %v1230_v47, %v1234_v23  ;;  %v2320_v45 = vcombine.low %v1238_v28, %v1242_v31  ;;  %v828_v25 = vpop.xlane.xlu1 %827 }
 0x2a0   :  { %v4405_v48 = vpop.eup %4404  ;;  %v2321_v29 = vcombine.low %v1246_v33, %v1250_v37  ;;  %v2322_v50 = vcombine.low %v1254_v38, %v1258_v39  ;;  %v867_v53 = vadd.f32 %v4860_v62, %v819_v35  ;;  %v858_v54 = vadd.f32 %v4860_v62, %v792_v36 }
 0x2a1   :  { %v4407_v56 = vpop.eup %4406  ;;  %v993_v57 = vadd.f32 1.0, %v4405_v48  ;;  %3707 = vperm.xlu1 %4326, %v2416_v40   ;;  %v2329_v58 = vrot.slane %v2319_v44, %v4900_v7  ;;  %v2336_v32 = vrot.slane %v2320_v45, %v4900_v7  ;;  %v1326_v4 = vrot.slane %v4944_v24, %v4875_v52 }
 0x2a2   :  { %v984_v51 = vadd.f32 1.0, %v4407_v56  ;;  %v2343_v5 = vrot.slane %v2321_v29, %v4900_v7  ;;  %v2350_v8 = vrot.slane %v2322_v50, %v4900_v7  ;;  %v899_v9 = vsub.f32 0.0, %v867_v53 }
 0x2a3   :  { %4416 = vrcp.f32 %v993_v57  ;;  %v2351_v10 = vcombine.low %v2329_v58, %v2336_v32  ;;  %v890_v11 = vsub.f32 0.0, %v858_v54  ;;  %v1330_v12 = vrot.slane %v4944_v24, %v4878_v55 }
 0x2a4   :  { %v5078_v14 = vpop.eup %4408  ;;  %4418 = vrcp.f32 %v984_v51  ;;  %v2352_v16 = vcombine.low %v2343_v5, %v2350_v8  ;;  %v955_v17 = vmul.f32 1.442695, %v899_v9  ;;  %v1334_v18 = vrot.slane %v4944_v24, %v4881_v59 }
 0x2a5   :  { %v2359_v19 = vrot.slane %v2351_v10, %v4900_v7  ;;  %v937_v20 = vmul.f32 1.442695, %v890_v11  ;;  %v1338_v47 = vrot.slane %v4944_v24, %v4884_v61  ;;  %v1342_v23 = vrot.slane %v4944_v24, %v4887_v63 }
 0x2a6   :  { %v5087_v26 = vpop.eup %4410  ;;  %v2366_v28 = vrot.slane %v2352_v16, %v4900_v7  ;;  %4420 = vpow2.f32 %v955_v17  ;;  %v1346_v30 = vrot.slane %v4944_v24, %v4890_v0  ;;  %v1350_v42 = vrot.slane %v4944_v24, %v4894_v3 }
 0x2a7   :  { %4422 = vpow2.f32 %v937_v20  ;;  %v1354_v31 = vrot.slane %v4944_v24, %v4897_v6  ;;  %v2466_v33 = vcombine.low %v1326_v4, %v1330_v12  ;;  %v2467_v35 = vcombine.low %v1334_v18, %v1338_v47 }
 0x2a8   :  { %v4413_v36 = vpop.eup %4412  ;;  %v2367_v37 = vcombine.low %v2359_v19, %v2366_v28  ;;  %v2468_v38 = vcombine.low %v1342_v23, %v1346_v30  ;;  %v870_v39 = vadd.f32 %v4860_v62, %v828_v25  ;;  %v1294_v40 = vrot.slane %v4952_v43, %v4875_v52 }
 0x2a9   :  { %v4415_v44 = vpop.eup %4414  ;;  %v996_v45 = vadd.f32 1.0, %v4413_v36  ;;  %v2469_v48 = vcombine.low %v1350_v42, %v1354_v31  ;;  %v2476_v29 = vrot.slane %v2466_v33, %v4900_v7  ;;  %v2483_v50 = vrot.slane %v2467_v35, %v4900_v7 }
 0x2aa   :  { %v985_v53 = vadd.f32 1.0, %v4415_v44  ;;  %3704 = vperm.xlu1 %4326, %v2367_v37   ;;  %v2490_v24 = vrot.slane %v2468_v38, %v4900_v7  ;;  %v902_v54 = vsub.f32 0.0, %v870_v39  ;;  %v1298_v56 = vrot.slane %v4952_v43, %v4878_v55 }
 0x2ab   :  { %4424 = vrcp.f32 %v996_v45  ;;  %v2497_v57 = vrot.slane %v2469_v48, %v4900_v7  ;;  %v2498_v58 = vcombine.low %v2476_v29, %v2483_v50  ;;  %v1302_v32 = vrot.slane %v4952_v43, %v4881_v59  ;;  %v825_v48 = vpop.xlane.xlu1 %824 }
 0x2ac   :  { %4426 = vrcp.f32 %v985_v53  ;;  %v961_v4 = vmul.f32 1.442695, %v902_v54  ;;  %v1306_v51 = vrot.slane %v4952_v43, %v4884_v61  ;;  %v1310_v5 = vrot.slane %v4952_v43, %v4887_v63 }
 0x2ad   :  { %v5111_v8 = vpop.eup %4416  ;;  %v2499_v9 = vcombine.low %v2490_v24, %v2497_v57  ;;  %v2506_v10 = vrot.slane %v2498_v58, %v4900_v7  ;;  %v1314_v11 = vrot.slane %v4952_v43, %v4890_v0  ;;  %v1318_v12 = vrot.slane %v4952_v43, %v4894_v3 }
 0x2ae   :  { %v5118_v16 = vpop.eup %4418  ;;  %4428 = vpow2.f32 %v961_v4  ;;  %v1322_v17 = vrot.slane %v4952_v43, %v4897_v6  ;;  %v2417_v18 = vcombine.low %v1294_v40, %v1298_v56  ;;  %v2418_v19 = vcombine.low %v1302_v32, %v1306_v51 }
 0x2af   :  { %v2513_v20 = vrot.slane %v2499_v9, %v4900_v7  ;;  %v2419_v47 = vcombine.low %v1310_v5, %v1314_v11  ;;  %v1390_v23 = vrot.slane %v4968_v2, %v4875_v52  ;;  %v1394_v25 = vrot.slane %v4968_v2, %v4878_v55 }
 0x2b0   :  { %v4421_v28 = vpop.eup %4420  ;;  %v2420_v30 = vcombine.low %v1318_v12, %v1322_v17  ;;  %v2427_v42 = vrot.slane %v2417_v18, %v4900_v7  ;;  %v2434_v31 = vrot.slane %v2418_v19, %v4900_v7  ;;  %v1398_v43 = vrot.slane %v4968_v2, %v4881_v59 }
 0x2b1   :  { %v4423_v33 = vpop.eup %4422  ;;  %v995_v35 = vadd.f32 1.0, %v4421_v28  ;;  %v2514_v36 = vcombine.low %v2506_v10, %v2513_v20  ;;  %v2441_v37 = vrot.slane %v2419_v47, %v4900_v7  ;;  %v1402_v38 = vrot.slane %v4968_v2, %v4884_v61 }
 0x2b2   :  { %v986_v39 = vadd.f32 1.0, %v4423_v33  ;;  %v2448_v40 = vrot.slane %v2420_v30, %v4900_v7  ;;  %v2449_v44 = vcombine.low %v2427_v42, %v2434_v31  ;;  %v1406_v45 = vrot.slane %v4968_v2, %v4887_v63 }
 0x2b3   :  { %4430 = vrcp.f32 %v995_v35  ;;  %3713 = vperm.xlu1 %4326, %v2514_v36   ;;  %v1410_v29 = vrot.slane %v4968_v2, %v4890_v0  ;;  %v1414_v50 = vrot.slane %v4968_v2, %v4894_v3  ;;  %v1418_v53 = vrot.slane %v4968_v2, %v4897_v6 }
 0x2b4   :  { %4432 = vrcp.f32 %v986_v39  ;;  %v2450_v24 = vcombine.low %v2441_v37, %v2448_v40  ;;  %v2457_v54 = vrot.slane %v2449_v44, %v4900_v7  ;;  %v2564_v56 = vcombine.low %v1390_v23, %v1394_v25 }
 0x2b5   :  { %v5144_v57 = vpop.eup %4424  ;;  %v2565_v58 = vcombine.low %v1398_v43, %v1402_v38  ;;  %v2566_v32 = vcombine.low %v1406_v45, %v1410_v29  ;;  %v2567_v4 = vcombine.low %v1414_v50, %v1418_v53  ;;  %v869_v51 = vadd.f32 %v4860_v62, %v825_v48  ;;  %v834_v38 = vpop.xlane.xlu1 %833 }
 0x2b6   :  { %v5147_v5 = vpop.eup %4426  ;;  %v2464_v9 = vrot.slane %v2450_v24, %v4900_v7  ;;  %v2574_v10 = vrot.slane %v2564_v56, %v4900_v7  ;;  %v1358_v2 = vrot.slane %v4980_v27, %v4875_v52  ;;  %v1362_v11 = vrot.slane %v4980_v27, %v4878_v55 }
 0x2b7   :  { %v2581_v12 = vrot.slane %v2565_v58, %v4900_v7  ;;  %v2588_v17 = vrot.slane %v2566_v32, %v4900_v7  ;;  %v2595_v18 = vrot.slane %v2567_v4, %v4900_v7  ;;  %v901_v19 = vsub.f32 0.0, %v869_v51 }
 0x2b8   :  { %v4429_v20 = vpop.eup %4428  ;;  %v2465_v47 = vcombine.low %v2457_v54, %v2464_v9  ;;  %v1366_v23 = vrot.slane %v4980_v27, %v4881_v59  ;;  %v1370_v25 = vrot.slane %v4980_v27, %v4884_v61  ;;  %v1374_v28 = vrot.slane %v4980_v27, %v4887_v63 }
 0x2b9   :  { %v998_v30 = vadd.f32 1.0, %v4429_v20  ;;  %v2596_v42 = vcombine.low %v2574_v10, %v2581_v12  ;;  %v2597_v31 = vcombine.low %v2588_v17, %v2595_v18  ;;  %v959_v43 = vmul.f32 1.442695, %v901_v19 }
 0x2ba   :  { %3710 = vperm.xlu1 %4326, %v2465_v47   ;;  %v1378_v33 = vrot.slane %v4980_v27, %v4890_v0  ;;  %v1382_v35 = vrot.slane %v4980_v27, %v4894_v3  ;;  %v1386_v36 = vrot.slane %v4980_v27, %v4897_v6  ;;  %v2515_v37 = vcombine.low %v1358_v2, %v1362_v11 }
 0x2bb   :  { %4434 = vrcp.f32 %v998_v30  ;;  %v2604_v39 = vrot.slane %v2596_v42, %v4900_v7  ;;  %v2611_v40 = vrot.slane %v2597_v31, %v4900_v7  ;;  %v2516_v44 = vcombine.low %v1366_v23, %v1370_v25 }
 0x2bc   :  { %4436 = vpow2.f32 %v959_v43  ;;  %v2517_v45 = vcombine.low %v1374_v28, %v1378_v33  ;;  %v2518_v48 = vcombine.low %v1382_v35, %v1386_v36  ;;  %v2525_v29 = vrot.slane %v2515_v37, %v4900_v7 }
 0x2bd   :  { %v5173_v50 = vpop.eup %4430  ;;  %v2612_v53 = vcombine.low %v2604_v39, %v2611_v40  ;;  %v2532_v24 = vrot.slane %v2516_v44, %v4900_v7  ;;  %v872_v27 = vadd.f32 %v4860_v62, %v834_v38  ;;  %v1646_v54 = vrot.slane %v4992_v49, %v4875_v52 }
 0x2be   :  { %v5179_v56 = vpop.eup %4432  ;;  %v2539_v58 = vrot.slane %v2517_v45, %v4900_v7  ;;  %v2546_v32 = vrot.slane %v2518_v48, %v4900_v7  ;;  %v1650_v4 = vrot.slane %v4992_v49, %v4878_v55  ;;  %v1654_v51 = vrot.slane %v4992_v49, %v4881_v59 }
 0x2bf   :  { %3719 = vperm.xlu0 %4327, %v2612_v53   ;;  %v2547_v9 = vcombine.low %v2525_v29, %v2532_v24  ;;  %v904_v10 = vsub.f32 0.0, %v872_v27  ;;  %v1658_v2 = vrot.slane %v4992_v49, %v4884_v61  ;;  %v1662_v11 = vrot.slane %v4992_v49, %v4887_v63  ;;  %v831_v29 = vpop.xlane.xlu1 %830 }
 0x2c0   :  { %v2548_v12 = vcombine.low %v2539_v58, %v2546_v32  ;;  %v1666_v17 = vrot.slane %v4992_v49, %v4890_v0  ;;  %v1670_v18 = vrot.slane %v4992_v49, %v4894_v3  ;;  %v1674_v19 = vrot.slane %v4992_v49, %v4897_v6 }
 0x2c1   :  { %v2555_v20 = vrot.slane %v2547_v9, %v4900_v7  ;;  %v965_v47 = vmul.f32 1.442695, %v904_v10  ;;  %v2956_v23 = vcombine.low %v1646_v54, %v1650_v4  ;;  %v2957_v25 = vcombine.low %v1654_v51, %v1658_v2 }
 0x2c2   :  { %v2562_v28 = vrot.slane %v2548_v12, %v4900_v7  ;;  %v2958_v30 = vcombine.low %v1662_v11, %v1666_v17  ;;  %v2959_v42 = vcombine.low %v1670_v18, %v1674_v19  ;;  %v1454_v31 = vrot.slane %v5000_v1, %v4875_v52 }
 0x2c3   :  { %4438 = vpow2.f32 %v965_v47  ;;  %v2966_v43 = vrot.slane %v2956_v23, %v4900_v7  ;;  %v2973_v33 = vrot.slane %v2957_v25, %v4900_v7  ;;  %v1458_v49 = vrot.slane %v5000_v1, %v4878_v55 }
 0x2c4   :  { %v2563_v35 = vcombine.low %v2555_v20, %v2562_v28  ;;  %v2980_v36 = vrot.slane %v2958_v30, %v4900_v7  ;;  %v2987_v37 = vrot.slane %v2959_v42, %v4900_v7  ;;  %v1462_v38 = vrot.slane %v5000_v1, %v4881_v59 }
 0x2c5   :  { %v5209_v39 = vpop.eup %4434  ;;  %v2988_v40 = vcombine.low %v2966_v43, %v2973_v33  ;;  %v1466_v44 = vrot.slane %v5000_v1, %v4884_v61  ;;  %v1470_v45 = vrot.slane %v5000_v1, %v4887_v63  ;;  %v1474_v48 = vrot.slane %v5000_v1, %v4890_v0 }
 0x2c6   :  { %v4437_v53 = vpop.eup %4436  ;;  %3716 = vperm.xlu1 %4326, %v2563_v35   ;;  %v2989_v24 = vcombine.low %v2980_v36, %v2987_v37  ;;  %v1478_v27 = vrot.slane %v5000_v1, %v4894_v3  ;;  %v1482_v54 = vrot.slane %v5000_v1, %v4897_v6  ;;  %v2662_v58 = vcombine.low %v1454_v31, %v1458_v49 }
 0x2c7   :  { %v997_v32 = vadd.f32 1.0, %v4437_v53  ;;  %v2996_v4 = vrot.slane %v2988_v40, %v4900_v7  ;;  %v2663_v51 = vcombine.low %v1462_v38, %v1466_v44  ;;  %v2664_v9 = vcombine.low %v1470_v45, %v1474_v48 }
 0x2c8   :  { %v3003_v10 = vrot.slane %v2989_v24, %v4900_v7  ;;  %v2665_v2 = vcombine.low %v1478_v27, %v1482_v54  ;;  %v2672_v11 = vrot.slane %v2662_v58, %v4900_v7  ;;  %v871_v12 = vadd.f32 %v4860_v62, %v831_v29 }
 0x2c9   :  { %4440 = vrcp.f32 %v997_v32  ;;  %v2679_v17 = vrot.slane %v2663_v51, %v4900_v7  ;;  %v2686_v18 = vrot.slane %v2664_v9, %v4900_v7  ;;  %v1710_v1 = vrot.slane %v5008_v13, %v4875_v52 }
 0x2ca   :  { %v3004_v19 = vcombine.low %v2996_v4, %v3003_v10  ;;  %v2693_v20 = vrot.slane %v2665_v2, %v4900_v7  ;;  %v903_v47 = vsub.f32 0.0, %v871_v12  ;;  %v1714_v23 = vrot.slane %v5008_v13, %v4878_v55  ;;  %v837_v10 = vpop.xlane.xlu1 %836 }
 0x2cb   :  { %v2694_v25 = vcombine.low %v2672_v11, %v2679_v17  ;;  %v1718_v28 = vrot.slane %v5008_v13, %v4881_v59  ;;  %v1722_v30 = vrot.slane %v5008_v13, %v4884_v61  ;;  %v1726_v42 = vrot.slane %v5008_v13, %v4887_v63 }
 0x2cc   :  { %3743 = vperm.xlu0 %4327, %v3004_v19   ;;  %v2695_v31 = vcombine.low %v2686_v18, %v2693_v20  ;;  %v963_v43 = vmul.f32 1.442695, %v903_v47  ;;  %v1730_v33 = vrot.slane %v5008_v13, %v4890_v0  ;;  %v1734_v49 = vrot.slane %v5008_v13, %v4894_v3 }
 0x2cd   :  { %v4439_v35 = vpop.eup %4438  ;;  %v2702_v36 = vrot.slane %v2694_v25, %v4900_v7  ;;  %v1738_v37 = vrot.slane %v5008_v13, %v4897_v6  ;;  %v3054_v38 = vcombine.low %v1710_v1, %v1714_v23  ;;  %v3055_v40 = vcombine.low %v1718_v28, %v1722_v30 }
 0x2ce   :  { %v1000_v44 = vadd.f32 1.0, %v4439_v35  ;;  %v2709_v45 = vrot.slane %v2695_v31, %v4900_v7  ;;  %4442 = vpow2.f32 %v963_v43  ;;  %v3056_v48 = vcombine.low %v1726_v42, %v1730_v33 }
 0x2cf   :  { %v3057_v29 = vcombine.low %v1734_v49, %v1738_v37  ;;  %v3064_v53 = vrot.slane %v3054_v38, %v4900_v7  ;;  %v3071_v24 = vrot.slane %v3055_v40, %v4900_v7  ;;  %v1422_v27 = vrot.slane %v5015_v21, %v4875_v52 }
 0x2d0   :  { %4444 = vrcp.f32 %v1000_v44  ;;  %v2710_v54 = vcombine.low %v2702_v36, %v2709_v45  ;;  %v3078_v58 = vrot.slane %v3056_v48, %v4900_v7  ;;  %v1426_v13 = vrot.slane %v5015_v21, %v4878_v55 }
 0x2d1   :  { %v3085_v32 = vrot.slane %v3057_v29, %v4900_v7  ;;  %v3086_v4 = vcombine.low %v3064_v53, %v3071_v24  ;;  %v1430_v51 = vrot.slane %v5015_v21, %v4881_v59  ;;  %v1434_v9 = vrot.slane %v5015_v21, %v4884_v61 }
 0x2d2   :  { %3725 = vperm.xlu1 %4326, %v2710_v54   ;;  %v1438_v2 = vrot.slane %v5015_v21, %v4887_v63  ;;  %v1442_v11 = vrot.slane %v5015_v21, %v4890_v0  ;;  %v1446_v12 = vrot.slane %v5015_v21, %v4894_v3  ;;  %v1450_v17 = vrot.slane %v5015_v21, %v4897_v6 }
 0x2d3   :  { %v5266_v18 = vpop.eup %4440  ;;  %v3087_v1 = vcombine.low %v3078_v58, %v3085_v32  ;;  %v3094_v19 = vrot.slane %v3086_v4, %v4900_v7  ;;  %v2613_v20 = vcombine.low %v1422_v27, %v1426_v13  ;;  %v2614_v47 = vcombine.low %v1430_v51, %v1434_v9  ;;  %v840_v27 = vpop.xlane.xlu1 %839 }
 0x2d4   :  { %v2615_v23 = vcombine.low %v1438_v2, %v1442_v11  ;;  %v2616_v25 = vcombine.low %v1446_v12, %v1450_v17  ;;  %v873_v28 = vadd.f32 %v4860_v62, %v837_v10  ;;  %v1774_v30 = vrot.slane %v5026_v22, %v4875_v52 }
 0x2d5   :  { %v3101_v42 = vrot.slane %v3087_v1, %v4900_v7  ;;  %v2623_v31 = vrot.slane %v2613_v20, %v4900_v7  ;;  %v2630_v21 = vrot.slane %v2614_v47, %v4900_v7  ;;  %v1778_v43 = vrot.slane %v5026_v22, %v4878_v55 }
 0x2d6   :  { %v2637_v33 = vrot.slane %v2615_v23, %v4900_v7  ;;  %v2644_v49 = vrot.slane %v2616_v25, %v4900_v7  ;;  %v905_v35 = vsub.f32 0.0, %v873_v28  ;;  %v1782_v36 = vrot.slane %v5026_v22, %v4881_v59 }
 0x2d7   :  { %v3102_v37 = vcombine.low %v3094_v19, %v3101_v42  ;;  %v2645_v38 = vcombine.low %v2623_v31, %v2630_v21  ;;  %v1786_v40 = vrot.slane %v5026_v22, %v4884_v61  ;;  %v1790_v44 = vrot.slane %v5026_v22, %v4887_v63 }
 0x2d8   :  { %v4443_v45 = vpop.eup %4442  ;;  %v2646_v48 = vcombine.low %v2637_v33, %v2644_v49  ;;  %v967_v29 = vmul.f32 1.442695, %v905_v35  ;;  %v1794_v53 = vrot.slane %v5026_v22, %v4890_v0  ;;  %v1798_v24 = vrot.slane %v5026_v22, %v4894_v3 }
 0x2d9   :  { %v999_v54 = vadd.f32 1.0, %v4443_v45  ;;  %3749 = vperm.xlu0 %4327, %v3102_v37   ;;  %v2653_v58 = vrot.slane %v2645_v38, %v4900_v7  ;;  %v1802_v13 = vrot.slane %v5026_v22, %v4897_v6  ;;  %v3152_v32 = vcombine.low %v1774_v30, %v1778_v43 }
 0x2da   :  { %v5292_v4 = vpop.eup %4444  ;;  %v2660_v51 = vrot.slane %v2646_v48, %v4900_v7  ;;  %4446 = vpow2.f32 %v967_v29  ;;  %v3153_v9 = vcombine.low %v1782_v36, %v1786_v40  ;;  %v3154_v10 = vcombine.low %v1790_v44, %v1794_v53 }
 0x2db   :  { %4448 = vrcp.f32 %v999_v54  ;;  %v3155_v2 = vcombine.low %v1798_v24, %v1802_v13  ;;  %v3162_v11 = vrot.slane %v3152_v32, %v4900_v7  ;;  %v874_v12 = vadd.f32 %v4860_v62, %v840_v27 }
 0x2dc   :  { %v2661_v17 = vcombine.low %v2653_v58, %v2660_v51  ;;  %v3169_v1 = vrot.slane %v3153_v9, %v4900_v7  ;;  %v3176_v19 = vrot.slane %v3154_v10, %v4900_v7  ;;  %v1838_v22 = vrot.slane %v5078_v14, %v4875_v52 }
 0x2dd   :  { %v3183_v20 = vrot.slane %v3155_v2, %v4900_v7  ;;  %v906_v47 = vsub.f32 0.0, %v874_v12  ;;  %v1842_v23 = vrot.slane %v5078_v14, %v4878_v55  ;;  %v1846_v25 = vrot.slane %v5078_v14, %v4881_v59 }
 0x2de   :  { %3722 = vperm.xlu1 %4326, %v2661_v17   ;;  %v3184_v28 = vcombine.low %v3162_v11, %v3169_v1  ;;  %v1850_v62 = vrot.slane %v5078_v14, %v4884_v61  ;;  %v1854_v30 = vrot.slane %v5078_v14, %v4887_v63  ;;  %v1858_v42 = vrot.slane %v5078_v14, %v4890_v0 }
 0x2df   :  { %v3185_v31 = vcombine.low %v3176_v19, %v3183_v20  ;;  %v969_v21 = vmul.f32 1.442695, %v906_v47  ;;  %v1862_v43 = vrot.slane %v5078_v14, %v4894_v3  ;;  %v1866_v33 = vrot.slane %v5078_v14, %v4897_v6 }
 0x2e0   :  { %v3192_v49 = vrot.slane %v3184_v28, %v4900_v7  ;;  %v3250_v35 = vcombine.low %v1838_v22, %v1842_v23  ;;  %v3251_v36 = vcombine.low %v1846_v25, %v1850_v62  ;;  %v3252_v37 = vcombine.low %v1854_v30, %v1858_v42 }
 0x2e1   :  { %v3199_v38 = vrot.slane %v3185_v31, %v4900_v7  ;;  %4450 = vpow2.f32 %v969_v21  ;;  %v3253_v40 = vcombine.low %v1862_v43, %v1866_v33  ;;  %v1518_v44 = vrot.slane %v5118_v16, %v4875_v52 }
 0x2e2   :  { %v3260_v45 = vrot.slane %v3250_v35, %v4900_v7  ;;  %v3267_v48 = vrot.slane %v3251_v36, %v4900_v7  ;;  %v3274_v29 = vrot.slane %v3252_v37, %v4900_v7  ;;  %v1522_v14 = vrot.slane %v5118_v16, %v4878_v55 }
 0x2e3   :  { %v3200_v53 = vcombine.low %v3192_v49, %v3199_v38  ;;  %v3281_v24 = vrot.slane %v3253_v40, %v4900_v7  ;;  %v1526_v27 = vrot.slane %v5118_v16, %v4881_v59  ;;  %v1530_v54 = vrot.slane %v5118_v16, %v4884_v61 }
 0x2e4   :  { %v4447_v58 = vpop.eup %4446  ;;  %v3282_v13 = vcombine.low %v3260_v45, %v3267_v48  ;;  %v1534_v32 = vrot.slane %v5118_v16, %v4887_v63  ;;  %v1538_v51 = vrot.slane %v5118_v16, %v4890_v0  ;;  %v1542_v9 = vrot.slane %v5118_v16, %v4894_v3 }
 0x2e5   :  { %v5336_v10 = vpop.eup %4448  ;;  %v1001_v2 = vadd.f32 1.0, %v4447_v58  ;;  %3755 = vperm.xlu0 %4327, %v3200_v53   ;;  %v3283_v11 = vcombine.low %v3274_v29, %v3281_v24  ;;  %v1546_v12 = vrot.slane %v5118_v16, %v4897_v6  ;;  %v2760_v17 = vcombine.low %v1518_v44, %v1522_v14 }
 0x2e6   :  { %v3290_v1 = vrot.slane %v3282_v13, %v4900_v7  ;;  %v2761_v19 = vcombine.low %v1526_v27, %v1530_v54  ;;  %v2762_v22 = vcombine.low %v1534_v32, %v1538_v51  ;;  %v1902_v20 = vrot.slane %v5144_v57, %v4875_v52 }
 0x2e7   :  { %4452 = vrcp.f32 %v1001_v2  ;;  %v3297_v47 = vrot.slane %v3283_v11, %v4900_v7  ;;  %v2763_v23 = vcombine.low %v1542_v9, %v1546_v12  ;;  %v2770_v25 = vrot.slane %v2760_v17, %v4900_v7 }
 0x2e8   :  { %v2777_v28 = vrot.slane %v2761_v19, %v4900_v7  ;;  %v2784_v62 = vrot.slane %v2762_v22, %v4900_v7  ;;  %v1906_v16 = vrot.slane %v5144_v57, %v4878_v55  ;;  %v1910_v30 = vrot.slane %v5144_v57, %v4881_v59 }
 0x2e9   :  { %v3298_v42 = vcombine.low %v3290_v1, %v3297_v47  ;;  %v2791_v31 = vrot.slane %v2763_v23, %v4900_v7  ;;  %v1914_v21 = vrot.slane %v5144_v57, %v4884_v61  ;;  %v1918_v43 = vrot.slane %v5144_v57, %v4887_v63 }
 0x2ea   :  { %v2792_v33 = vcombine.low %v2770_v25, %v2777_v28  ;;  %v1922_v49 = vrot.slane %v5144_v57, %v4890_v0  ;;  %v1926_v35 = vrot.slane %v5144_v57, %v4894_v3  ;;  %v1930_v36 = vrot.slane %v5144_v57, %v4897_v6 }
 0x2eb   :  { %v4451_v37 = vpop.eup %4450  ;;  %3761 = vperm.xlu0 %4327, %v3298_v42   ;;  %v2793_v38 = vcombine.low %v2784_v62, %v2791_v31  ;;  %v3348_v40 = vcombine.low %v1902_v20, %v1906_v16  ;;  %v3349_v44 = vcombine.low %v1910_v30, %v1914_v21  ;;  %v1486_v45 = vrot.slane %v5087_v26, %v4875_v52 }
 0x2ec   :  { %v1002_v48 = vadd.f32 1.0, %v4451_v37  ;;  %v2800_v29 = vrot.slane %v2792_v33, %v4900_v7  ;;  %v3350_v14 = vcombine.low %v1918_v43, %v1922_v49  ;;  %v3351_v53 = vcombine.low %v1926_v35, %v1930_v36 }
 0x2ed   :  { %v2807_v24 = vrot.slane %v2793_v38, %v4900_v7  ;;  %v3358_v27 = vrot.slane %v3348_v40, %v4900_v7  ;;  %v3365_v54 = vrot.slane %v3349_v44, %v4900_v7  ;;  %v1490_v57 = vrot.slane %v5087_v26, %v4878_v55 }
 0x2ee   :  { %4454 = vrcp.f32 %v1002_v48  ;;  %v3372_v58 = vrot.slane %v3350_v14, %v4900_v7  ;;  %v3379_v13 = vrot.slane %v3351_v53, %v4900_v7  ;;  %v1494_v32 = vrot.slane %v5087_v26, %v4881_v59 }
 0x2ef   :  { %v2808_v51 = vcombine.low %v2800_v29, %v2807_v24  ;;  %v3380_v9 = vcombine.low %v3358_v27, %v3365_v54  ;;  %v1498_v2 = vrot.slane %v5087_v26, %v4884_v61  ;;  %v1502_v11 = vrot.slane %v5087_v26, %v4887_v63 }
 0x2f0   :  { %v3381_v12 = vcombine.low %v3372_v58, %v3379_v13  ;;  %v1506_v17 = vrot.slane %v5087_v26, %v4890_v0  ;;  %v1510_v1 = vrot.slane %v5087_v26, %v4894_v3  ;;  %v1514_v19 = vrot.slane %v5087_v26, %v4897_v6 }
 0x2f1   :  { %v5384_v22 = vpop.eup %4452  ;;  %3731 = vperm.xlu1 %4326, %v2808_v51   ;;  %v3388_v20 = vrot.slane %v3380_v9, %v4900_v7  ;;  %v2711_v47 = vcombine.low %v1486_v45, %v1490_v57  ;;  %v2712_v23 = vcombine.low %v1494_v32, %v1498_v2  ;;  %v1614_v25 = vrot.slane %v5036_v46, %v4875_v52 }
 0x2f2   :  { %v3395_v28 = vrot.slane %v3381_v12, %v4900_v7  ;;  %v2713_v62 = vcombine.low %v1502_v11, %v1506_v17  ;;  %v2714_v16 = vcombine.low %v1510_v1, %v1514_v19  ;;  %v1618_v30 = vrot.slane %v5036_v46, %v4878_v55 }
 0x2f3   :  { %v2721_v42 = vrot.slane %v2711_v47, %v4900_v7  ;;  %v2728_v26 = vrot.slane %v2712_v23, %v4900_v7  ;;  %v1622_v31 = vrot.slane %v5036_v46, %v4881_v59  ;;  %v1626_v21 = vrot.slane %v5036_v46, %v4884_v61 }
 0x2f4   :  { %v3396_v43 = vcombine.low %v3388_v20, %v3395_v28  ;;  %v2735_v33 = vrot.slane %v2713_v62, %v4900_v7  ;;  %v2742_v49 = vrot.slane %v2714_v16, %v4900_v7  ;;  %v1630_v35 = vrot.slane %v5036_v46, %v4887_v63 }
 0x2f5   :  { %v2743_v36 = vcombine.low %v2721_v42, %v2728_v26  ;;  %v1634_v37 = vrot.slane %v5036_v46, %v4890_v0  ;;  %v1638_v38 = vrot.slane %v5036_v46, %v4894_v3  ;;  %v1642_v40 = vrot.slane %v5036_v46, %v4897_v6 }
 0x2f6   :  { %3767 = vperm.xlu0 %4327, %v3396_v43   ;;  %v2744_v44 = vcombine.low %v2735_v33, %v2742_v49  ;;  %v2907_v45 = vcombine.low %v1614_v25, %v1618_v30  ;;  %v2908_v48 = vcombine.low %v1622_v31, %v1626_v21  ;;  %v1966_v29 = vrot.slane %v5209_v39, %v4875_v52 }
 0x2f7   :  { %v2751_v14 = vrot.slane %v2743_v36, %v4900_v7  ;;  %v2909_v53 = vcombine.low %v1630_v35, %v1634_v37  ;;  %v2910_v24 = vcombine.low %v1638_v38, %v1642_v40  ;;  %v1970_v27 = vrot.slane %v5209_v39, %v4878_v55 }
 0x2f8   :  { %v5413_v54 = vpop.eup %4454  ;;  %v2758_v57 = vrot.slane %v2744_v44, %v4900_v7  ;;  %v2917_v46 = vrot.slane %v2907_v45, %v4900_v7  ;;  %v2924_v58 = vrot.slane %v2908_v48, %v4900_v7  ;;  %v1974_v13 = vrot.slane %v5209_v39, %v4881_v59 }
 0x2f9   :  { %v2931_v32 = vrot.slane %v2909_v53, %v4900_v7  ;;  %v2938_v51 = vrot.slane %v2910_v24, %v4900_v7  ;;  %v1978_v9 = vrot.slane %v5209_v39, %v4884_v61  ;;  %v1982_v2 = vrot.slane %v5209_v39, %v4887_v63 }
 0x2fa   :  { %v2759_v11 = vcombine.low %v2751_v14, %v2758_v57  ;;  %v2939_v12 = vcombine.low %v2917_v46, %v2924_v58  ;;  %v1986_v17 = vrot.slane %v5209_v39, %v4890_v0  ;;  %v1990_v1 = vrot.slane %v5209_v39, %v4894_v3 }
 0x2fb   :  { %v2940_v19 = vcombine.low %v2931_v32, %v2938_v51  ;;  %v1994_v20 = vrot.slane %v5209_v39, %v4897_v6  ;;  %v3446_v47 = vcombine.low %v1966_v29, %v1970_v27  ;;  %v3447_v23 = vcombine.low %v1974_v13, %v1978_v9 }
 0x2fc   :  { %3728 = vperm.xlu1 %4326, %v2759_v11   ;;  %v2947_v25 = vrot.slane %v2939_v12, %v4900_v7  ;;  %v3448_v28 = vcombine.low %v1982_v2, %v1986_v17  ;;  %v1678_v62 = vrot.slane %v5048_v15, %v4875_v52  ;;  %v1682_v16 = vrot.slane %v5048_v15, %v4878_v55 }
 0x2fd   :  { %v2954_v30 = vrot.slane %v2940_v19, %v4900_v7  ;;  %v3449_v42 = vcombine.low %v1990_v1, %v1994_v20  ;;  %v3456_v26 = vrot.slane %v3446_v47, %v4900_v7  ;;  %v3463_v31 = vrot.slane %v3447_v23, %v4900_v7 }
 0x2fe   :  { %v3470_v39 = vrot.slane %v3448_v28, %v4900_v7  ;;  %v1686_v21 = vrot.slane %v5048_v15, %v4881_v59  ;;  %v1690_v43 = vrot.slane %v5048_v15, %v4884_v61  ;;  %v1694_v33 = vrot.slane %v5048_v15, %v4887_v63 }
 0x2ff   :  { %v2955_v49 = vcombine.low %v2947_v25, %v2954_v30  ;;  %v3477_v35 = vrot.slane %v3449_v42, %v4900_v7  ;;  %v3478_v36 = vcombine.low %v3456_v26, %v3463_v31  ;;  %v1698_v37 = vrot.slane %v5048_v15, %v4890_v0 }
 0x300   :  { %v1702_v38 = vrot.slane %v5048_v15, %v4894_v3  ;;  %v1706_v40 = vrot.slane %v5048_v15, %v4897_v6  ;;  %v3005_v44 = vcombine.low %v1678_v62, %v1682_v16  ;;  %v3006_v45 = vcombine.low %v1686_v21, %v1690_v43 }
 0x301   :  { %3740 = vperm.xlu1 %4326, %v2955_v49   ;;  %v3479_v48 = vcombine.low %v3470_v39, %v3477_v35  ;;  %v3486_v29 = vrot.slane %v3478_v36, %v4900_v7  ;;  %v3007_v14 = vcombine.low %v1694_v33, %v1698_v37  ;;  %v1934_v53 = vrot.slane %v5266_v18, %v4875_v52 }
 0x302   :  { %v3008_v24 = vcombine.low %v1702_v38, %v1706_v40  ;;  %v3015_v27 = vrot.slane %v3005_v44, %v4900_v7  ;;  %v3022_v57 = vrot.slane %v3006_v45, %v4900_v7  ;;  %v1938_v46 = vrot.slane %v5266_v18, %v4878_v55 }
 0x303   :  { %v3493_v15 = vrot.slane %v3479_v48, %v4900_v7  ;;  %v3029_v58 = vrot.slane %v3007_v14, %v4900_v7  ;;  %v1942_v13 = vrot.slane %v5266_v18, %v4881_v59  ;;  %v1946_v32 = vrot.slane %v5266_v18, %v4884_v61 }
 0x304   :  { %v3036_v51 = vrot.slane %v3008_v24, %v4900_v7  ;;  %v3037_v9 = vcombine.low %v3015_v27, %v3022_v57  ;;  %v1950_v2 = vrot.slane %v5266_v18, %v4887_v63  ;;  %v1954_v11 = vrot.slane %v5266_v18, %v4890_v0 }
 0x305   :  { %v3494_v12 = vcombine.low %v3486_v29, %v3493_v15  ;;  %v1958_v17 = vrot.slane %v5266_v18, %v4894_v3  ;;  %v1962_v1 = vrot.slane %v5266_v18, %v4897_v6  ;;  %v3397_v19 = vcombine.low %v1934_v53, %v1938_v46 }
 0x306   :  { %v3038_v20 = vcombine.low %v3029_v58, %v3036_v51  ;;  %v3045_v47 = vrot.slane %v3037_v9, %v4900_v7  ;;  %v3398_v23 = vcombine.low %v1942_v13, %v1946_v32  ;;  %v3399_v25 = vcombine.low %v1950_v2, %v1954_v11 }
 0x307   :  { %3773 = vperm.xlu0 %4327, %v3494_v12   ;;  %v3400_v28 = vcombine.low %v1958_v17, %v1962_v1  ;;  %v3407_v62 = vrot.slane %v3397_v19, %v4900_v7  ;;  %v1742_v16 = vrot.slane %v5040_v60, %v4875_v52  ;;  %v1746_v30 = vrot.slane %v5040_v60, %v4878_v55 }
 0x308   :  { %v3052_v42 = vrot.slane %v3038_v20, %v4900_v7  ;;  %v3414_v18 = vrot.slane %v3398_v23, %v4900_v7  ;;  %v3421_v26 = vrot.slane %v3399_v25, %v4900_v7  ;;  %v1750_v31 = vrot.slane %v5040_v60, %v4881_v59 }
 0x309   :  { %v3428_v39 = vrot.slane %v3400_v28, %v4900_v7  ;;  %v1754_v21 = vrot.slane %v5040_v60, %v4884_v61  ;;  %v1758_v43 = vrot.slane %v5040_v60, %v4887_v63  ;;  %v1762_v33 = vrot.slane %v5040_v60, %v4890_v0 }
 0x30a   :  { %v3053_v49 = vcombine.low %v3045_v47, %v3052_v42  ;;  %v3429_v35 = vcombine.low %v3407_v62, %v3414_v18  ;;  %v1766_v36 = vrot.slane %v5040_v60, %v4894_v3  ;;  %v1770_v37 = vrot.slane %v5040_v60, %v4897_v6 }
 0x30b   :  { %v3430_v38 = vcombine.low %v3421_v26, %v3428_v39  ;;  %v3103_v40 = vcombine.low %v1742_v16, %v1746_v30  ;;  %v3104_v44 = vcombine.low %v1750_v31, %v1754_v21  ;;  %v3105_v45 = vcombine.low %v1758_v43, %v1762_v33 }
 0x30c   :  { %3746 = vperm.xlu1 %4326, %v3053_v49   ;;  %v3437_v48 = vrot.slane %v3429_v35, %v4900_v7  ;;  %v3106_v29 = vcombine.low %v1766_v36, %v1770_v37  ;;  %v2030_v14 = vrot.slane %v5292_v4, %v4875_v52  ;;  %v2034_v53 = vrot.slane %v5292_v4, %v4878_v55 }
 0x30d   :  { %v3444_v24 = vrot.slane %v3430_v38, %v4900_v7  ;;  %v3113_v27 = vrot.slane %v3103_v40, %v4900_v7  ;;  %v3120_v60 = vrot.slane %v3104_v44, %v4900_v7  ;;  %v3127_v57 = vrot.slane %v3105_v45, %v4900_v7 }
 0x30e   :  { %v3134_v46 = vrot.slane %v3106_v29, %v4900_v7  ;;  %v2038_v15 = vrot.slane %v5292_v4, %v4881_v59  ;;  %v2042_v58 = vrot.slane %v5292_v4, %v4884_v61  ;;  %v2046_v13 = vrot.slane %v5292_v4, %v4887_v63 }
 0x30f   :  { %v3445_v32 = vcombine.low %v3437_v48, %v3444_v24  ;;  %v3135_v51 = vcombine.low %v3113_v27, %v3120_v60  ;;  %v2050_v9 = vrot.slane %v5292_v4, %v4890_v0  ;;  %v2054_v2 = vrot.slane %v5292_v4, %v4894_v3 }
 0x310   :  { %v3136_v11 = vcombine.low %v3127_v57, %v3134_v46  ;;  %v2058_v12 = vrot.slane %v5292_v4, %v4897_v6  ;;  %v3544_v17 = vcombine.low %v2030_v14, %v2034_v53  ;;  %v3545_v1 = vcombine.low %v2038_v15, %v2042_v58 }
 0x311   :  { %3770 = vperm.xlu0 %4327, %v3445_v32   ;;  %v3143_v19 = vrot.slane %v3135_v51, %v4900_v7  ;;  %v3546_v20 = vcombine.low %v2046_v13, %v2050_v9  ;;  %v1806_v47 = vrot.slane %v5111_v8, %v4875_v52  ;;  %v1810_v23 = vrot.slane %v5111_v8, %v4878_v55 }
 0x312   :  { %v3150_v25 = vrot.slane %v3136_v11, %v4900_v7  ;;  %v3547_v28 = vcombine.low %v2054_v2, %v2058_v12  ;;  %v3554_v62 = vrot.slane %v3544_v17, %v4900_v7  ;;  %v3561_v16 = vrot.slane %v3545_v1, %v4900_v7 }
 0x313   :  { %v3568_v4 = vrot.slane %v3546_v20, %v4900_v7  ;;  %v1814_v30 = vrot.slane %v5111_v8, %v4881_v59  ;;  %v1818_v42 = vrot.slane %v5111_v8, %v4884_v61  ;;  %v1822_v18 = vrot.slane %v5111_v8, %v4887_v63 }
 0x314   :  { %v3151_v26 = vcombine.low %v3143_v19, %v3150_v25  ;;  %v3575_v31 = vrot.slane %v3547_v28, %v4900_v7  ;;  %v3576_v39 = vcombine.low %v3554_v62, %v3561_v16  ;;  %v1826_v21 = vrot.slane %v5111_v8, %v4890_v0 }
 0x315   :  { %v1830_v43 = vrot.slane %v5111_v8, %v4894_v3  ;;  %v1834_v33 = vrot.slane %v5111_v8, %v4897_v6  ;;  %v3201_v49 = vcombine.low %v1806_v47, %v1810_v23  ;;  %v3202_v35 = vcombine.low %v1814_v30, %v1818_v42 }
 0x316   :  { %3752 = vperm.xlu1 %4326, %v3151_v26   ;;  %v3577_v36 = vcombine.low %v3568_v4, %v3575_v31  ;;  %v3584_v37 = vrot.slane %v3576_v39, %v4900_v7  ;;  %v3203_v38 = vcombine.low %v1822_v18, %v1826_v21  ;;  %v1998_v40 = vrot.slane %v5336_v10, %v4875_v52 }
 0x317   :  { %v3204_v44 = vcombine.low %v1830_v43, %v1834_v33  ;;  %v3211_v45 = vrot.slane %v3201_v49, %v4900_v7  ;;  %v3218_v48 = vrot.slane %v3202_v35, %v4900_v7  ;;  %v2002_v29 = vrot.slane %v5336_v10, %v4878_v55 }
 0x318   :  { %v3591_v8 = vrot.slane %v3577_v36, %v4900_v7  ;;  %v3225_v14 = vrot.slane %v3203_v38, %v4900_v7  ;;  %v2006_v53 = vrot.slane %v5336_v10, %v4881_v59  ;;  %v2010_v24 = vrot.slane %v5336_v10, %v4884_v61 }
 0x319   :  { %v3232_v27 = vrot.slane %v3204_v44, %v4900_v7  ;;  %v3233_v60 = vcombine.low %v3211_v45, %v3218_v48  ;;  %v2014_v57 = vrot.slane %v5336_v10, %v4887_v63  ;;  %v2018_v46 = vrot.slane %v5336_v10, %v4890_v0 }
 0x31a   :  { %v3592_v15 = vcombine.low %v3584_v37, %v3591_v8  ;;  %v2022_v58 = vrot.slane %v5336_v10, %v4894_v3  ;;  %v2026_v13 = vrot.slane %v5336_v10, %v4897_v6  ;;  %v3495_v32 = vcombine.low %v1998_v40, %v2002_v29 }
 0x31b   :  { %v3234_v51 = vcombine.low %v3225_v14, %v3232_v27  ;;  %v3241_v9 = vrot.slane %v3233_v60, %v4900_v7  ;;  %v3496_v2 = vcombine.low %v2006_v53, %v2010_v24  ;;  %v3497_v11 = vcombine.low %v2014_v57, %v2018_v46 }
 0x31c   :  { %3779 = vperm.xlu0 %4327, %v3592_v15   ;;  %v3498_v12 = vcombine.low %v2022_v58, %v2026_v13  ;;  %v3505_v17 = vrot.slane %v3495_v32, %v4900_v7  ;;  %v1870_v1 = vrot.slane %v5173_v50, %v4875_v52  ;;  %v1874_v19 = vrot.slane %v5173_v50, %v4878_v55 }
 0x31d   :  { %v3248_v20 = vrot.slane %v3234_v51, %v4900_v7  ;;  %v3512_v10 = vrot.slane %v3496_v2, %v4900_v7  ;;  %v3519_v47 = vrot.slane %v3497_v11, %v4900_v7  ;;  %v1878_v23 = vrot.slane %v5173_v50, %v4881_v59 }
 0x31e   :  { %v3526_v25 = vrot.slane %v3498_v12, %v4900_v7  ;;  %v1882_v28 = vrot.slane %v5173_v50, %v4884_v61  ;;  %v1886_v62 = vrot.slane %v5173_v50, %v4887_v63  ;;  %v1890_v16 = vrot.slane %v5173_v50, %v4890_v0 }
 0x31f   :  { %v3249_v4 = vcombine.low %v3241_v9, %v3248_v20  ;;  %v3527_v30 = vcombine.low %v3505_v17, %v3512_v10  ;;  %v1894_v42 = vrot.slane %v5173_v50, %v4894_v3  ;;  %v1898_v18 = vrot.slane %v5173_v50, %v4897_v6 }
 0x320   :  { %v3528_v26 = vcombine.low %v3519_v47, %v3526_v25  ;;  %v3299_v31 = vcombine.low %v1870_v1, %v1874_v19  ;;  %v3300_v39 = vcombine.low %v1878_v23, %v1882_v28  ;;  %v3301_v21 = vcombine.low %v1886_v62, %v1890_v16 }
 0x321   :  { %3758 = vperm.xlu1 %4326, %v3249_v4   ;;  %v3535_v43 = vrot.slane %v3527_v30, %v4900_v7  ;;  %v3302_v33 = vcombine.low %v1894_v42, %v1898_v18  ;;  %v2062_v49 = vrot.slane %v5384_v22, %v4875_v52  ;;  %v2066_v35 = vrot.slane %v5384_v22, %v4878_v55 }
 0x322   :  { %v3542_v36 = vrot.slane %v3528_v26, %v4900_v7  ;;  %v3309_v37 = vrot.slane %v3299_v31, %v4900_v7  ;;  %v3316_v50 = vrot.slane %v3300_v39, %v4900_v7  ;;  %v3323_v38 = vrot.slane %v3301_v21, %v4900_v7 }
 0x323   :  { %v3330_v40 = vrot.slane %v3302_v33, %v4900_v7  ;;  %v2070_v44 = vrot.slane %v5384_v22, %v4881_v59  ;;  %v2074_v45 = vrot.slane %v5384_v22, %v4884_v61  ;;  %v2078_v48 = vrot.slane %v5384_v22, %v4887_v63 }
 0x324   :  { %v3543_v29 = vcombine.low %v3535_v43, %v3542_v36  ;;  %v3331_v8 = vcombine.low %v3309_v37, %v3316_v50  ;;  %v2082_v14 = vrot.slane %v5384_v22, %v4890_v0  ;;  %v2086_v53 = vrot.slane %v5384_v22, %v4894_v3 }
 0x325   :  { %v3332_v24 = vcombine.low %v3323_v38, %v3330_v40  ;;  %v2090_v27 = vrot.slane %v5384_v22, %v4897_v6  ;;  %v3593_v60 = vcombine.low %v2062_v49, %v2066_v35  ;;  %v3594_v57 = vcombine.low %v2070_v44, %v2074_v45 }
 0x326   :  { %3776 = vperm.xlu0 %4327, %v3543_v29   ;;  %v3339_v46 = vrot.slane %v3331_v8, %v4900_v7  ;;  %v3595_v15 = vcombine.low %v2078_v48, %v2082_v14  ;;  %v1550_v58 = vrot.slane %v5147_v5, %v4875_v52  ;;  %v1554_v13 = vrot.slane %v5147_v5, %v4878_v55 }
 0x327   :  { %v3346_v32 = vrot.slane %v3332_v24, %v4900_v7  ;;  %v3596_v51 = vcombine.low %v2086_v53, %v2090_v27  ;;  %v3603_v9 = vrot.slane %v3593_v60, %v4900_v7  ;;  %v3610_v2 = vrot.slane %v3594_v57, %v4900_v7 }
 0x328   :  { %v3617_v22 = vrot.slane %v3595_v15, %v4900_v7  ;;  %v1558_v11 = vrot.slane %v5147_v5, %v4881_v59  ;;  %v1562_v12 = vrot.slane %v5147_v5, %v4884_v61  ;;  %v1566_v17 = vrot.slane %v5147_v5, %v4887_v63 }
 0x329   :  { %v3347_v1 = vcombine.low %v3339_v46, %v3346_v32  ;;  %v3624_v19 = vrot.slane %v3596_v51, %v4900_v7  ;;  %v3625_v20 = vcombine.low %v3603_v9, %v3610_v2  ;;  %v1570_v10 = vrot.slane %v5147_v5, %v4890_v0 }
 0x32a   :  { %v1574_v47 = vrot.slane %v5147_v5, %v4894_v3  ;;  %v1578_v23 = vrot.slane %v5147_v5, %v4897_v6  ;;  %v2809_v25 = vcombine.low %v1550_v58, %v1554_v13  ;;  %v2810_v28 = vcombine.low %v1558_v11, %v1562_v12 }
 0x32b   :  { %3764 = vperm.xlu1 %4326, %v3347_v1   ;;  %v3626_v62 = vcombine.low %v3617_v22, %v3624_v19  ;;  %v3633_v16 = vrot.slane %v3625_v20, %v4900_v7  ;;  %v2811_v4 = vcombine.low %v1566_v17, %v1570_v10  ;;  %v2094_v30 = vrot.slane %v5413_v54, %v4875_v52 }
 0x32c   :  { %v2812_v42 = vcombine.low %v1574_v47, %v1578_v23  ;;  %v2819_v18 = vrot.slane %v2809_v25, %v4900_v7  ;;  %v2826_v26 = vrot.slane %v2810_v28, %v4900_v7  ;;  %v2098_v31 = vrot.slane %v5413_v54, %v4878_v55  ;;  %v3696_v47 = vpop.permute.xlu1 %3695 }
 0x32d   :  { %v3640_v5 = vrot.slane %v3626_v62, %v4900_v7  ;;  %v2833_v39 = vrot.slane %v2811_v4, %v4900_v7  ;;  %v2102_v21 = vrot.slane %v5413_v54, %v4881_v59  ;;  %v2106_v43 = vrot.slane %v5413_v54, %v4884_v61 }
 0x32e   :  { %v2840_v33 = vrot.slane %v2812_v42, %v4900_v7  ;;  %v2841_v49 = vcombine.low %v2819_v18, %v2826_v26  ;;  %v2110_v35 = vrot.slane %v5413_v54, %v4887_v63  ;;  %v2114_v36 = vrot.slane %v5413_v54, %v4890_v0  ;;  %v3693_v18 = vpop.permute.xlu0 %3692 }
 0x32f   :  { %v3641_v37 = vcombine.low %v3633_v16, %v3640_v5  ;;  %v2118_v50 = vrot.slane %v5413_v54, %v4894_v3  ;;  %v2122_v38 = vrot.slane %v5413_v54, %v4897_v6  ;;  %v3642_v40 = vcombine.low %v2094_v30, %v2098_v31 }
 0x330   :  { %v2842_v44 = vcombine.low %v2833_v39, %v2840_v33  ;;  %v2849_v45 = vrot.slane %v2841_v49, %v4900_v7  ;;  %v3643_v48 = vcombine.low %v2102_v21, %v2106_v43  ;;  %v3644_v29 = vcombine.low %v2110_v35, %v2114_v36  ;;  %v5682_v23 = vpop.permute.xlu1 %3701 }
 0x331   :  { %3782 = vperm.xlu0 %4327, %v3641_v37   ;;  %v3645_v8 = vcombine.low %v2118_v50, %v2122_v38  ;;  %v3652_v14 = vrot.slane %v3642_v40, %v4900_v7  ;;  %v1582_v53 = vrot.slane %v5179_v56, %v4875_v52  ;;  %v1586_v24 = vrot.slane %v5179_v56, %v4878_v55 }
 0x332   :  { %v2856_v27 = vrot.slane %v2842_v44, %v4900_v7  ;;  %v3659_v54 = vrot.slane %v3643_v48, %v4900_v7  ;;  %v3666_v60 = vrot.slane %v3644_v29, %v4900_v7  ;;  %v1590_v57 = vrot.slane %v5179_v56, %v4881_v59 }
 0x333   :  { %v3673_v46 = vrot.slane %v3645_v8, %v4900_v7  ;;  %v1594_v15 = vrot.slane %v5179_v56, %v4884_v61  ;;  %v1598_v52 = vrot.slane %v5179_v56, %v4887_v63  ;;  %v1602_v55 = vrot.slane %v5179_v56, %v4890_v0 }
 0x334   :  { %v2857_v58 = vcombine.low %v2849_v45, %v2856_v27  ;;  %v3674_v13 = vcombine.low %v3652_v14, %v3659_v54  ;;  %v1606_v32 = vrot.slane %v5179_v56, %v4894_v3  ;;  %v1610_v51 = vrot.slane %v5179_v56, %v4897_v6  ;;  %v3699_v25 = vpop.permute.xlu1 %3698 }
 0x335   :  { %v3675_v59 = vcombine.low %v3666_v60, %v3673_v46  ;;  %v2858_v9 = vcombine.low %v1582_v53, %v1586_v24  ;;  %v2859_v2 = vcombine.low %v1590_v57, %v1594_v15  ;;  %v2860_v22 = vcombine.low %v1598_v52, %v1602_v55 }
 0x336   :  { %3734 = vperm.xlu1 %4326, %v2857_v58   ;;  %v3682_v61 = vrot.slane %v3674_v13, %v4900_v7  ;;  %v2861_v11 = vcombine.low %v1606_v32, %v1610_v51  ;;  %v5705_v35 = vand.u32 127, %v1099_v34 }
 0x337   :  { %v3689_v63 = vrot.slane %v3675_v59, %v4900_v7  ;;  %v2868_v0 = vrot.slane %v2858_v9, %v4900_v7  ;;  %v2875_v12 = vrot.slane %v2859_v2, %v4900_v7  ;;  %v2882_v17 = vrot.slane %v2860_v22, %v4900_v7 }
 0x338   :  { %v2889_v3 = vrot.slane %v2861_v11, %v4900_v7  ;;  %v5684_v28 = vpop.permute.xlu1 %3707  ;;  %v3800_v50 = vadd.s32 4294967280, %v5705_v35  ;;  %v3793_v38 = vadd.s32 4294967288, %v5705_v35  ;;  %v3791_v44 = vsub.s32 %v5705_v35, %v4871_v41 }
 0x339   :  { %v3690_v1 = vcombine.low %v3682_v61, %v3689_v63  ;;  %v2890_v6 = vcombine.low %v2868_v0, %v2875_v12  ;;  %v3814_v48 = vadd.s32 4294967264, %v5705_v35  ;;  %v3807_v8 = vadd.s32 4294967272, %v5705_v35 }
 0x33a   :  { %v2891_v56 = vcombine.low %v2882_v17, %v2889_v3  ;;  %v3803_v45 = vsub.s32 %v3800_v50, %v4871_v41  ;;  %v3796_v29 = vsub.s32 %v3793_v38, %v4871_v41  ;;  %v3828_v57 = vadd.s32 4294967248, %v5705_v35 }
 0x33b   :  { %3785 = vperm.xlu0 %4327, %v3690_v1   ;;  %v2898_v19 = vrot.slane %v2890_v6, %v4900_v7  ;;  %v3817_v60 = vsub.s32 %v3814_v48, %v4871_v41  ;;  %v3810_v46 = vsub.s32 %v3807_v8, %v4871_v41  ;;  %v3821_v15 = vadd.s32 4294967256, %v5705_v35 }
 0x33c   :  { %v2905_v20 = vrot.slane %v2891_v56, %v4900_v7  ;;  %v5686_v62 = vpop.permute.xlu1 %3704  ;;  %v3792_v13 = vrot.slane %v3693_v18, %v3791_v44  ;;  %v3797_v9 = vrot.slane %v3696_v47, %v3796_v29  ;;  %v3804_v2 = vrot.slane %v3699_v25, %v3803_v45 }
 0x33d   :  { %v3831_v22 = vsub.s32 %v3828_v57, %v4871_v41  ;;  %v3824_v61 = vsub.s32 %v3821_v15, %v4871_v41  ;;  %v3835_v11 = vadd.s32 4294967240, %v5705_v35  ;;  %v3842_v0 = vadd.s32 4294967232, %v5705_v35 }
 0x33e   :  { %v2906_v10 = vcombine.low %v2898_v19, %v2905_v20  ;;  %v5696_v26 = vpop.permute.xlu0 %3719  ;;  %v3799_v3 = vsel %vm3798_vm2, %v3797_v9, %v3792_v13  ;;  %v3849_v1 = vadd.s32 4294967224, %v5705_v35  ;;  %v3818_v19 = vrot.slane %v5686_v62, %v3817_v60 }
 0x33f   :  { %v3806_v56 = vsel %vm3805_vm3, %v3804_v2, %v3799_v3  ;;  %v3811_v20 = vrot.slane %v5682_v23, %v3810_v46  ;;  %v3845_v18 = vsub.s32 %v3842_v0, %v4871_v41  ;;  %v3863_v38 = vadd.s32 4294967208, %v5705_v35 }
 0x340   :  { %3737 = vperm.xlu1 %4326, %v2906_v10   ;;  %v5688_v16 = vpop.permute.xlu1 %3713  ;;  %v3838_v10 = vsub.s32 %v3835_v11, %v4871_v41 }
 0x342   :  { %v3839_v15 = vrot.slane %v5688_v16, %v3838_v10 }
 0x344   :  { %v5690_v4 = vpop.permute.xlu1 %3710 }
 0x345   :  { %v3832_v48 = vrot.slane %v5690_v4, %v3831_v22 }
 0x348   :  { %v5692_v30 = vpop.permute.xlu1 %3716 }
 0x349   :  { %v3846_v57 = vrot.slane %v5692_v30, %v3845_v18  ;;  %v3891_v30 = vadd.s32 4294967176, %v5705_v35 }
 0x34b   :  { %v3744_v5 = vpop.permute.xlu0 %3743  ;;  %v3894_v0 = vsub.s32 %v3891_v30, %v4871_v41 }
 0x34c   :  { %v3905_v54 = vrot.slane %v3744_v5, %v3796_v29  ;;  %v3856_v5 = vadd.s32 4294967216, %v5705_v35 }
 0x34e   :  { %v3859_v29 = vsub.s32 %v3856_v5, %v4871_v41 }
 0x351   :  { %v5694_v42 = vpop.permute.xlu1 %3725 }
 0x358   :  { %v3750_v21 = vpop.permute.xlu0 %3749 }
 0x359   :  { %v3915_v32 = vrot.slane %v3750_v21, %v3810_v46 }
 0x35d   :  { %v5698_v31 = vpop.permute.xlu1 %3722 }
 0x35e   :  { %v3860_v16 = vrot.slane %v5698_v31, %v3859_v29 }
 0x364   :  { %v3756_v33 = vpop.permute.xlu0 %3755 }
 0x365   :  { %v3925_v6 = vrot.slane %v3756_v33, %v3824_v61  ;;  %v3813_v33 = vsel %vm3812_vm4, %v3811_v20, %v3806_v56 }
 0x366   :  { %v3820_v23 = vsel %vm3819_vm5, %v3818_v19, %v3813_v33 }
 0x36a   :  { %v5707_v36 = vpop.permute.xlu0 %3761 }
 0x36b   :  { %v3935_v62 = vrot.slane %v5707_v36, %v3838_v10  ;;  %v3825_v36 = vrot.slane %v5684_v28, %v3824_v61  ;;  %v3877_v28 = vadd.s32 4294967192, %v5705_v35 }
 0x370   :  { %v5700_v39 = vpop.permute.xlu1 %3731 }
 0x375   :  { %v5711_v40 = vpop.permute.xlu0 %3767 }
 0x37b   :  { %v5702_v43 = vpop.permute.xlu1 %3728 }
 0x380   :  { %v3741_v49 = vpop.permute.xlu1 %3740 }
 0x381   :  { %v3901_v14 = vrot.slane %v3741_v49, %v3791_v44  ;;  %v3852_v49 = vsub.s32 %v3849_v1, %v4871_v41 }
 0x383   :  { %v3906_v52 = vsel %vm3798_vm2, %v3905_v54, %v3901_v14  ;;  %v3945_v44 = vrot.slane %v5711_v40, %v3852_v49  ;;  %v3866_v40 = vsub.s32 %v3863_v38, %v4871_v41  ;;  %v3853_v2 = vrot.slane %v5696_v26, %v3852_v49 }
 0x385   :  { %v3867_v26 = vrot.slane %v5694_v42, %v3866_v40 }
 0x386   :  { %v5719_v53 = vpop.permute.xlu0 %3773 }
 0x38b   :  { %v3747_v37 = vpop.permute.xlu1 %3746 }
 0x38c   :  { %v3910_v27 = vrot.slane %v3747_v37, %v3803_v45 }
 0x38e   :  { %v3911_v55 = vsel %vm3805_vm3, %v3910_v27, %v3906_v52  ;;  %v3870_v27 = vadd.s32 4294967200, %v5705_v35  ;;  %v3955_v52 = vrot.slane %v5719_v53, %v3866_v40  ;;  %v3880_v53 = vsub.s32 %v3877_v28, %v4871_v41 }
 0x38f   :  { %v3916_v63 = vsel %vm3812_vm4, %v3915_v32, %v3911_v55 }
 0x390   :  { %v3771_v51 = vpop.permute.xlu0 %3770  ;;  %v3873_v55 = vsub.s32 %v3870_v27, %v4871_v41 }
 0x391   :  { %v3950_v54 = vrot.slane %v3771_v51, %v3859_v29 }
 0x395   :  { %v3753_v24 = vpop.permute.xlu1 %3752 }
 0x396   :  { %v3920_v58 = vrot.slane %v3753_v24, %v3817_v60  ;;  %v3827_v60 = vsel %vm3826_vm6, %v3825_v36, %v3820_v23 }
 0x397   :  { %v3834_v4 = vsel %vm3833_vm7, %v3832_v48, %v3827_v60 }
 0x398   :  { %v3921_v12 = vsel %vm3819_vm5, %v3920_v58, %v3916_v63  ;;  %v3884_v58 = vadd.s32 4294967184, %v5705_v35  ;;  %v3841_v13 = vsel %vm3840_vm8, %v3839_v15, %v3834_v4 }
 0x399   :  { %v3926_v47 = vsel %vm3826_vm6, %v3925_v6, %v3921_v12  ;;  %v3874_v12 = vrot.slane %v5702_v43, %v3873_v55 }
 0x39a   :  { %v3887_v61 = vsub.s32 %v3884_v58, %v4871_v41  ;;  %v3881_v41 = vrot.slane %v5700_v39, %v3880_v53 }
 0x39b   :  { %v3780_v25 = vpop.permute.xlu0 %3779 }
 0x39c   :  { %v3965_v63 = vrot.slane %v3780_v25, %v3880_v53 }
 0x3a0   :  { %v3759_v59 = vpop.permute.xlu1 %3758 }
 0x3a1   :  { %v3930_v17 = vrot.slane %v3759_v59, %v3831_v22  ;;  %v3848_v59 = vsel %vm3847_vm9, %v3846_v57, %v3841_v13 }
 0x3a2   :  { %v3855_v11 = vsel %vm3854_vm10, %v3853_v2, %v3848_v59 }
 0x3a3   :  { %v3931_v21 = vsel %vm3833_vm7, %v3930_v17, %v3926_v47  ;;  %v3862_v35 = vsel %vm3861_vm11, %v3860_v16, %v3855_v11 }
 0x3a4   :  { %v3936_v45 = vsel %vm3840_vm8, %v3935_v62, %v3931_v21  ;;  %v3869_v6 = vsel %vm3868_vm12, %v3867_v26, %v3862_v35 }
 0x3a5   :  { %v3777_v24 = vpop.permute.xlu0 %3776  ;;  %v3876_v19 = vsel %vm3875_vm13, %v3874_v12, %v3869_v6 }
 0x3a6   :  { %v3960_v9 = vrot.slane %v3777_v24, %v3873_v55  ;;  %v3883_v43 = vsel %vm3882_vm14, %v3881_v41, %v3876_v19 }
 0x3aa   :  { %v3765_v37 = vpop.permute.xlu1 %3764 }
 0x3ab   :  { %v3940_v50 = vrot.slane %v3765_v37, %v3845_v18 }
 0x3ad   :  { %v3941_v8 = vsel %vm3847_vm9, %v3940_v50, %v3936_v45 }
 0x3ae   :  { %v3946_v14 = vsel %vm3854_vm10, %v3945_v44, %v3941_v8 }
 0x3af   :  { %v3951_v46 = vsel %vm3861_vm11, %v3950_v54, %v3946_v14 }
 0x3b0   :  { %v3956_v32 = vsel %vm3868_vm12, %v3955_v52, %v3951_v46  ;;  %v3783_v51 = vpop.permute.xlu0 %3782 }
 0x3b1   :  { %v3961_v22 = vsel %vm3875_vm13, %v3960_v9, %v3956_v32  ;;  %v3970_v1 = vrot.slane %v3783_v51, %v3887_v61 }
 0x3b2   :  { %v3966_v17 = vsel %vm3882_vm14, %v3965_v63, %v3961_v22 }
 0x3b3   :  { %v3971_v10 = vsel %vm3889_vm15, %v3970_v1, %v3966_v17 }
 0x3b5   :  { %v3735_v31 = vpop.permute.xlu1 %3734 }
 0x3b6   :  { %v3888_v20 = vrot.slane %v3735_v31, %v3887_v61 }
 0x3b8   :  { %v3890_v5 = vsel %vm3889_vm15, %v3888_v20, %v3883_v43 }
 0x3ba   :  { %v3786_v3 = vpop.permute.xlu0 %3785 }
 0x3bb   :  { %v3975_v56 = vrot.slane %v3786_v3, %v3894_v0 }
 0x3bd   :  { %v3976_v18 = vsel %vm3896_vm0, %v3975_v56, %v3971_v10 }
 0x3bf   :  { %v3738_v47 = vpop.permute.xlu1 %3737 }
 0x3c0   :  { %v3895_v25 = vrot.slane %v3738_v47, %v3894_v0 }
 0x3c2   :  { %v3897_v42 = vsel %vm3896_vm0, %v3895_v25, %v3890_v5 }
 0x3c3   :  { %v3977_v21 = vcombine.low %v3897_v42, %v3976_v18 }
 0x3c5   :  { %v3984_v33 = vrot.slane %v3977_v21, %v4900_v7 }
 0x3c7   :  { %v3991_v49 = vrot.slane %v3984_v33, %v4900_v7 }
 0x3c9   :  { %3997 = vst.msk [vmem:[#allocation3] sm:$0x3] %vm3995_vm1, %v3991_v49 }
 0x3ca   :  { %4467 = shalt.err (!%p4464_p4)
}
 0x3cb   :  { %s4468_s1 = scalar_lea.hbm %s5805_s7, 32 }
 0x3cc   :  { %p4469_p5 = scmp.ne.s32.totalorder %s5805_s7, %s4468_s1  ;;  %p4472_p6 = scmp.lt.u32.totalorder %s4468_s1, %s5805_s7 }
 0x3ce   :  { %p4474_p7 = pnand %p4472_p6, %p4469_p5 }
 0x3d0   :  { %4477 = shalt.err (!%p4474_p7)
}
 0x3d1   :  { %4007 = dma.vmem_to_hbm [thread:$0]  %s4005_s11, 32, %s5805_s7, [#allocation4]  }
 0x3d2   :  { %4478 = dma.done.wait [#allocation4], 32  }
 0x3d3   :  { %4479 = vsyncadd [#allocation4], 4294967264 }
 0x3d4   :  { %4011 = vsyncpa [#allocation4], 1 }

</bundles_post_ra>
